<compile_context>
chip_gen: v7x
topology: tpu7x:2x2x1
jax: 0.10.0
libtpu: 0.0.40
codegen_flags: <defaults>
</compile_context>

<pallas_src>
import numpy as np
import jax
import jax.numpy as jnp
from jax import lax
from jax.experimental import pallas as pl
from jax.experimental.pallas import tpu as pltpu

_VMEM_LIMIT = 32 * 1024 * 1024


# ----------------------------------------------------------------------------
# Wrapper-side weight lowering: 3x3x3 DHWIO conv -> 3 banded matmul RHS matrices
# ----------------------------------------------------------------------------
def _banded_weight(w_dhwio, H, W, pad_out):
    """Returns B (3, (H+2)*(W+2)*Cin, Ho*Wo*Cout) s.t. for a zero-padded,
    (h,w,c)-folded activation a of shape (D+2, (H+2)*(W+2)*Cin):
        out[d] = sum_kd a[d + kd] @ B[kd]
    is the "same" conv output, folded over (h, w, cout).  If pad_out, output columns
    use padded (H+2, W+2) coordinates with halo columns identically zero."""
    Cin, Cout = int(w_dhwio.shape[3]), int(w_dhwio.shape[4])
    Hi, Wi = H + 2, W + 2
    Ho, Wo = (Hi, Wi) if pad_out else (H, W)
    off = 1 if pad_out else 0
    oh = np.zeros((Hi, Ho, 3), np.float32)
    ow = np.zeros((Wi, Wo, 3), np.float32)
    for kh in range(3):
        for ho in range(Ho):
            if 0 <= ho - off < H:
                oh[ho - off + kh, ho, kh] = 1.0
    for kw in range(3):
        for wo in range(Wo):
            if 0 <= wo - off < W:
                ow[wo - off + kw, wo, kw] = 1.0
    b = jnp.einsum('abcio,pxb,qyc->apqixyo', w_dhwio,
                   jnp.asarray(oh), jnp.asarray(ow))
    return b.reshape(3, Hi * Wi * Cin, Ho * Wo * Cout)


# ----------------------------------------------------------------------------
# Kernel A: conv1 (3 banded matmuls) + BN1 batch-stat partials, padded output
# ----------------------------------------------------------------------------
def _conv1_kernel(x_ref, w_ref, b_ref, h_ref, s_ref, q_ref):
    # x_ref: (1, D+2, (H+2)(W+2)Cin)   zero-padded folded input
    # w_ref: (3, Li, Lm)               banded weights (halo output cols are zero)
    # b_ref: (1, Lm)                   bias folded into padded coords (halo cols zero)
    # h_ref: (1, D+2, Lm)              conv1 output, padded folded layout, zero halos
    # s_ref, q_ref: (1, 1, Lm)         per-sample sum / sum-of-squares partials
    D = h_ref.shape[1] - 2
    Lo = h_ref.shape[2]
    x = x_ref[0]                                        # (D+2, Li) — single dense load
    acc = jnp.zeros((D, Lo), jnp.float32)
    for kd in range(3):                                 # K = (H+2)(W+2)Cin per dot
        acc = acc + jnp.dot(x[kd:kd + D, :], w_ref[kd],
                            preferred_element_type=jnp.float32)
    acc = acc + b_ref[...]
    h_ref[...] = jnp.zeros_like(h_ref)                  # zero halos
    h_ref[0, pl.ds(1, D), :] = acc.astype(h_ref.dtype)  # interior rows
    s_ref[...] = jnp.sum(acc, axis=0, keepdims=True)[None]
    q_ref[...] = jnp.sum(acc * acc, axis=0, keepdims=True)[None]


# ----------------------------------------------------------------------------
# Kernel B: (BN1 affine + ReLU fused on input) -> conv2 + BN2 batch-stat partials
# ----------------------------------------------------------------------------
def _bn_relu_conv2_kernel(h_ref, sc_ref, sh_ref, w_ref, b_ref, o_ref, s_ref, q_ref):
    # h_ref : (1, D+2, Lm)  raw conv1 output, padded folded layout
    # sc/sh : (1, Lm)       folded BN1 scale/shift (zero at h/w halo columns)
    # w_ref : (3, Lm, Lo)   banded conv2 weights (unpadded output coords)
    # b_ref : (1, Lo)
    # o_ref : (1, D, Lo)    raw conv2 output (pre-BN2)
    # s/q   : (1, 1, Lo)    per-sample BN2 sum / sum-of-squares partials
    Dp2 = h_ref.shape[1]
    D = Dp2 - 2
    Lo = o_ref.shape[2]
    x = h_ref[0]                                              # (D+2, Lm)
    a = jnp.maximum(x * sc_ref[...] + sh_ref[...], 0.0)       # fused BN1 + ReLU
    row = lax.broadcasted_iota(jnp.int32, (Dp2, 1), 0)
    a = jnp.where((row >= 1) & (row <= D), a, 0.0)            # zero d-halo rows
    acc = jnp.zeros((D, Lo), jnp.float32)
    for kd in range(3):
        acc = acc + jnp.dot(a[kd:kd + D, :], w_ref[kd],
                            preferred_element_type=jnp.float32)
    acc = acc + b_ref[...]
    o_ref[...] = acc[None].astype(o_ref.dtype)
    s_ref[...] = jnp.sum(acc, axis=0, keepdims=True)[None]
    q_ref[...] = jnp.sum(acc * acc, axis=0, keepdims=True)[None]


# ----------------------------------------------------------------------------
# Kernel C: final BN2 affine + ReLU (lane-dense elementwise)
# ----------------------------------------------------------------------------
def _bn_relu_kernel(x_ref, sc_ref, sh_ref, o_ref):
    o_ref[...] = jnp.maximum(
        x_ref[...] * sc_ref[...] + sh_ref[...], 0.0).astype(o_ref.dtype)


# ----------------------------------------------------------------------------
# Module forward: conv -> BN -> ReLU -> conv -> BN -> ReLU  (NCDHW in/out)
# ----------------------------------------------------------------------------
def down_double_3d_conv(x_ncdhw, params, eps=1e-5):
    N, Cin, D, H, W = x_ncdhw.shape
    Cmid = params["w1"].shape[-1]
    Cout = params["w2"].shape[-1]
    Hi, Wi = H + 2, W + 2
    Li = Hi * Wi * Cin
    Lm = Hi * Wi * Cmid
    Lo = H * W * Cout

    cp = pltpu.CompilerParams(dimension_semantics=("parallel",),
                              vmem_limit_bytes=_VMEM_LIMIT)

    # boundary: NCDHW -> zero-padded, (h,w,c)-folded layout (one-time)
    x = jnp.transpose(x_ncdhw, (0, 2, 3, 4, 1))
    x = jnp.pad(x, ((0, 0), (1, 1), (1, 1), (1, 1), (0, 0)))
    x = x.reshape(N, D + 2, Li).astype(jnp.float32)

    interior = np.zeros((Hi, Wi, 1), np.float32)
    interior[1:H + 1, 1:W + 1, :] = 1.0
    interior = jnp.asarray(interior)

    w1b = _banded_weight(params["w1"], H, W, pad_out=True)    # (3, Li, Lm)
    w2b = _banded_weight(params["w2"], H, W, pad_out=False)   # (3, Lm, Lo)
    b1f = (jnp.broadcast_to(params["b1"], (Hi, Wi, Cmid)) * interior).reshape(1, Lm)
    b2f = jnp.broadcast_to(params["b2"], (H, W, Cout)).reshape(1, Lo)

    # ---- pass 1: conv1 + BN1 stats ----
    h1, s1, q1 = pl.pallas_call(
        _conv1_kernel,
        out_shape=(jax.ShapeDtypeStruct((N, D + 2, Lm), jnp.float32),
                   jax.ShapeDtypeStruct((N, 1, Lm), jnp.float32),
                   jax.ShapeDtypeStruct((N, 1, Lm), jnp.float32)),
        grid_spec=pltpu.PrefetchScalarGridSpec(
            num_scalar_prefetch=0,
            grid=(N,),
            in_specs=[
                pl.BlockSpec((1, D + 2, Li), lambda n: (n, 0, 0)),
                pl.BlockSpec((3, Li, Lm), lambda n: (0, 0, 0)),
                pl.BlockSpec((1, Lm), lambda n: (0, 0)),
            ],
            out_specs=[
                pl.BlockSpec((1, D + 2, Lm), lambda n: (n, 0, 0)),
                pl.BlockSpec((1, 1, Lm), lambda n: (n, 0, 0)),
                pl.BlockSpec((1, 1, Lm), lambda n: (n, 0, 0)),
            ],
        ),
        compiler_params=cp,
    )(x, w1b, b1f)

    cnt = jnp.float32(N * D * H * W)
    # TODO(synk): single-pass E[x^2]-E[x]^2 can cancel at very large N*D*H*W; use a
    # centered second pass / Welford if that regime matters.
    s1c = s1.sum(axis=(0, 1)).reshape(Hi, Wi, Cmid).sum(axis=(0, 1))
    q1c = q1.sum(axis=(0, 1)).reshape(Hi, Wi, Cmid).sum(axis=(0, 1))
    mean1 = s1c / cnt
    var1 = q1c / cnt - mean1 * mean1
    scale1 = params["gamma1"] * lax.rsqrt(var1 + eps)
    shift1 = params["beta1"] - mean1 * scale1
    sc1f = (jnp.broadcast_to(scale1, (Hi, Wi, Cmid)) * interior).reshape(1, Lm)
    sh1f = (jnp.broadcast_to(shift1, (Hi, Wi, Cmid)) * interior).reshape(1, Lm)

    # ---- pass 2: BN1+ReLU (fused) -> conv2 + BN2 stats ----
    h2, s2, q2 = pl.pallas_call(
        _bn_relu_conv2_kernel,
        out_shape=(jax.ShapeDtypeStruct((N, D, Lo), jnp.float32),
                   jax.ShapeDtypeStruct((N, 1, Lo), jnp.float32),
                   jax.ShapeDtypeStruct((N, 1, Lo), jnp.float32)),
        grid_spec=pltpu.PrefetchScalarGridSpec(
            num_scalar_prefetch=0,
            grid=(N,),
            in_specs=[
                pl.BlockSpec((1, D + 2, Lm), lambda n: (n, 0, 0)),
                pl.BlockSpec((1, Lm), lambda n: (0, 0)),
                pl.BlockSpec((1, Lm), lambda n: (0, 0)),
                pl.BlockSpec((3, Lm, Lo), lambda n: (0, 0, 0)),
                pl.BlockSpec((1, Lo), lambda n: (0, 0)),
            ],
            out_specs=[
                pl.BlockSpec((1, D, Lo), lambda n: (n, 0, 0)),
                pl.BlockSpec((1, 1, Lo), lambda n: (n, 0, 0)),
                pl.BlockSpec((1, 1, Lo), lambda n: (n, 0, 0)),
            ],
        ),
        compiler_params=cp,
    )(h1, sc1f, sh1f, w2b, b2f)

    s2c = s2.sum(axis=(0, 1)).reshape(H, W, Cout).sum(axis=(0, 1))
    q2c = q2.sum(axis=(0, 1)).reshape(H, W, Cout).sum(axis=(0, 1))
    mean2 = s2c / cnt
    var2 = q2c / cnt - mean2 * mean2
    scale2 = params["gamma2"] * lax.rsqrt(var2 + eps)
    shift2 = params["beta2"] - mean2 * scale2
    sc2f = jnp.broadcast_to(scale2, (H, W, Cout)).reshape(1, Lo)
    sh2f = jnp.broadcast_to(shift2, (H, W, Cout)).reshape(1, Lo)

    # ---- pass 3: BN2 + ReLU ----
    out = pl.pallas_call(
        _bn_relu_kernel,
        out_shape=jax.ShapeDtypeStruct((N, D, Lo), jnp.float32),
        grid_spec=pltpu.PrefetchScalarGridSpec(
            num_scalar_prefetch=0,
            grid=(N,),
            in_specs=[
                pl.BlockSpec((1, D, Lo), lambda n: (n, 0, 0)),
                pl.BlockSpec((1, Lo), lambda n: (0, 0)),
                pl.BlockSpec((1, Lo), lambda n: (0, 0)),
            ],
            out_specs=pl.BlockSpec((1, D, Lo), lambda n: (n, 0, 0)),
        ),
        compiler_params=cp,
    )(h2, sc2f, sh2f)

    out = out.reshape(N, D, H, W, Cout)
    return jnp.transpose(out, (0, 4, 1, 2, 3))                # NDHWC -> NCDHW


# ----------------------------------------------------------------------------
# Pure-JAX reference for correctness check
# ----------------------------------------------------------------------------
def reference(x_ncdhw, params, eps=1e-5):
    x = jnp.transpose(x_ncdhw, (0, 2, 3, 4, 1))

    def conv(x, w, b):
        y = lax.conv_general_dilated(
            x, w, window_strides=(1, 1, 1), padding=[(1, 1)] * 3,
            dimension_numbers=("NDHWC", "DHWIO", "NDHWC"),
            precision=lax.Precision.HIGHEST)
        return y + b

    def bn_relu(x, g, b):
        m = x.mean(axis=(0, 1, 2, 3))
        v = x.var(axis=(0, 1, 2, 3))
        return jnp.maximum((x - m) / jnp.sqrt(v + eps) * g + b, 0.0)

    h = bn_relu(conv(x, params["w1"], params["b1"]),
                params["gamma1"], params["beta1"])
    h = bn_relu(conv(h, params["w2"], params["b2"]),
                params["gamma2"], params["beta2"])
    return jnp.transpose(h, (0, 4, 1, 2, 3))


if __name__ == "__main__":
    in_ch, out_ch = 4, 8
    N, D, H, W = 2, 8, 8, 8

    key = jax.random.PRNGKey(0)
    ks = jax.random.split(key, 10)
    x = jax.random.normal(ks[0], (N, in_ch, D, H, W), jnp.float32)

    params = {
        # conv weights stored DHWIO (kd, kh, kw, Cin, Cout); deterministic init
        "w1": 0.1 * jax.random.normal(ks[1], (3, 3, 3, in_ch, in_ch), jnp.float32),
        "b1": 0.1 * jax.random.normal(ks[2], (in_ch,), jnp.float32),
        "gamma1": 1.0 + 0.1 * jax.random.normal(ks[3], (in_ch,), jnp.float32),
        "beta1": 0.1 * jax.random.normal(ks[4], (in_ch,), jnp.float32),
        "w2": 0.1 * jax.random.normal(ks[5], (3, 3, 3, in_ch, out_ch), jnp.float32),
        "b2": 0.1 * jax.random.normal(ks[6], (out_ch,), jnp.float32),
        "gamma2": 1.0 + 0.1 * jax.random.normal(ks[7], (out_ch,), jnp.float32),
        "beta2": 0.1 * jax.random.normal(ks[8], (out_ch,), jnp.float32),
    }

    out = jax.block_until_ready(down_double_3d_conv(x, params))
    ref = jax.block_until_ready(reference(x, params))

    assert out.shape == (N, out_ch, D, H, W), out.shape
    np.testing.assert_allclose(np.asarray(out), np.asarray(ref),
                               rtol=1e-3, atol=1e-3)
    print("KERNEL_OK")
</pallas_src>

<mosaic_0001>
module attributes {stable_mosaic.version = 11 : i64} {
  func.func @_conv1_kernel(%arg0: i32, %arg1: memref<1x10x400xf32, #tpu.memory_space<vmem>>, %arg2: memref<3x400x400xf32, #tpu.memory_space<vmem>>, %arg3: memref<1x400xf32, #tpu.memory_space<vmem>>, %arg4: memref<1x10x400xf32, #tpu.memory_space<vmem>>, %arg5: memref<1x1x400xf32, #tpu.memory_space<vmem>>, %arg6: memref<1x1x400xf32, #tpu.memory_space<vmem>>) attributes {dimension_semantics = [#tpu.dimension_semantics<parallel>], iteration_bounds = array<i64: 2>, scalar_prefetch = 0 : i64, scratch_operands = 0 : i64, tpu.core_type = #tpu.core_type<tc>, window_params = [{transform_indices = @transform_0, window_bounds = array<i64: 1, 10, 400>}, {pipeline_mode = #tpu.pipeline_mode<synchronous>, transform_indices = @transform_1, window_bounds = array<i64: 3, 400, 400>}, {pipeline_mode = #tpu.pipeline_mode<synchronous>, transform_indices = @transform_2, window_bounds = array<i64: 1, 400>}, {transform_indices = @transform_3, window_bounds = array<i64: 1, 10, 400>}, {transform_indices = @transform_4, window_bounds = array<i64: 1, 1, 400>}, {transform_indices = @transform_5, window_bounds = array<i64: 1, 1, 400>}]} {
    %c0 = arith.constant 0 : index
    %c0_0 = arith.constant 0 : index
    %c0_1 = arith.constant 0 : index
    %0 = vector.load %arg1[%c0, %c0_0, %c0_1] : memref<1x10x400xf32, #tpu.memory_space<vmem>>, vector<1x10x400xf32>
    %1 = vector.shape_cast %0 : vector<1x10x400xf32> to vector<10x400xf32>
    %cst = arith.constant 0.000000e+00 : f32
    %2 = vector.broadcast %cst : f32 to vector<8x400xf32>
    %3 = vector.extract_strided_slice %1 {offsets = [0, 0], sizes = [8, 400], strides = [1, 1]} : vector<10x400xf32> to vector<8x400xf32>
    %c0_2 = arith.constant 0 : index
    %c0_3 = arith.constant 0 : index
    %c0_4 = arith.constant 0 : index
    %4 = vector.load %arg2[%c0_2, %c0_3, %c0_4] : memref<3x400x400xf32, #tpu.memory_space<vmem>>, vector<1x400x400xf32>
    %5 = vector.shape_cast %4 : vector<1x400x400xf32> to vector<400x400xf32>
    %cst_5 = arith.constant dense<0.000000e+00> : vector<8x400xf32>
    %6 = tpu.matmul %3, %5, %cst_5 {dimension_numbers = #tpu.dot_dimension_numbers<[1], [0], [0], [1], [0, 0, 1, 1], [], []>} : vector<8x400xf32>, vector<400x400xf32>, vector<8x400xf32> -> vector<8x400xf32>
    %7 = arith.addf %2, %6 : vector<8x400xf32>
    %8 = vector.extract_strided_slice %1 {offsets = [1, 0], sizes = [8, 400], strides = [1, 1]} : vector<10x400xf32> to vector<8x400xf32>
    %c1 = arith.constant 1 : index
    %c0_6 = arith.constant 0 : index
    %c0_7 = arith.constant 0 : index
    %9 = vector.load %arg2[%c1, %c0_6, %c0_7] : memref<3x400x400xf32, #tpu.memory_space<vmem>>, vector<1x400x400xf32>
    %10 = vector.shape_cast %9 : vector<1x400x400xf32> to vector<400x400xf32>
    %cst_8 = arith.constant dense<0.000000e+00> : vector<8x400xf32>
    %11 = tpu.matmul %8, %10, %cst_8 {dimension_numbers = #tpu.dot_dimension_numbers<[1], [0], [0], [1], [0, 0, 1, 1], [], []>} : vector<8x400xf32>, vector<400x400xf32>, vector<8x400xf32> -> vector<8x400xf32>
    %12 = arith.addf %7, %11 : vector<8x400xf32>
    %13 = vector.extract_strided_slice %1 {offsets = [2, 0], sizes = [8, 400], strides = [1, 1]} : vector<10x400xf32> to vector<8x400xf32>
    %c2 = arith.constant 2 : index
    %c0_9 = arith.constant 0 : index
    %c0_10 = arith.constant 0 : index
    %14 = vector.load %arg2[%c2, %c0_9, %c0_10] : memref<3x400x400xf32, #tpu.memory_space<vmem>>, vector<1x400x400xf32>
    %15 = vector.shape_cast %14 : vector<1x400x400xf32> to vector<400x400xf32>
    %cst_11 = arith.constant dense<0.000000e+00> : vector<8x400xf32>
    %16 = tpu.matmul %13, %15, %cst_11 {dimension_numbers = #tpu.dot_dimension_numbers<[1], [0], [0], [1], [0, 0, 1, 1], [], []>} : vector<8x400xf32>, vector<400x400xf32>, vector<8x400xf32> -> vector<8x400xf32>
    %17 = arith.addf %12, %16 : vector<8x400xf32>
    %c0_12 = arith.constant 0 : index
    %c0_13 = arith.constant 0 : index
    %18 = vector.load %arg3[%c0_12, %c0_13] : memref<1x400xf32, #tpu.memory_space<vmem>>, vector<1x400xf32>
    %19 = vector.broadcast %18 : vector<1x400xf32> to vector<8x400xf32>
    %20 = arith.addf %17, %19 : vector<8x400xf32>
    %cst_14 = arith.constant 0.000000e+00 : f32
    %21 = vector.broadcast %cst_14 : f32 to vector<1x10x400xf32>
    %c0_15 = arith.constant 0 : index
    %c0_16 = arith.constant 0 : index
    %c0_17 = arith.constant 0 : index
    %22 = vector.load %arg4[%c0_15, %c0_16, %c0_17] : memref<1x10x400xf32, #tpu.memory_space<vmem>>, vector<1x10x400xf32>
    tpu.vector_store %arg4[%c0_15, %c0_16, %c0_17], %21 {strides = array<i32>} : memref<1x10x400xf32, #tpu.memory_space<vmem>>, vector<1x10x400xf32>,
    %c0_18 = arith.constant 0 : index
    %c1_19 = arith.constant 1 : index
    %c0_20 = arith.constant 0 : index
    %23 = vector.load %arg4[%c0_18, %c1_19, %c0_20] : memref<1x10x400xf32, #tpu.memory_space<vmem>>, vector<1x8x400xf32>
    %24 = vector.shape_cast %23 : vector<1x8x400xf32> to vector<8x400xf32>
    %25 = vector.shape_cast %20 : vector<8x400xf32> to vector<1x8x400xf32>
    tpu.vector_store %arg4[%c0_18, %c1_19, %c0_20], %25 {strides = array<i32>} : memref<1x10x400xf32, #tpu.memory_space<vmem>>, vector<1x8x400xf32>,
    %cst_21 = arith.constant dense<0.000000e+00> : vector<400xf32>
    %26 = vector.multi_reduction <add>, %20, %cst_21 [0] : vector<8x400xf32> to vector<400xf32>
    %27 = vector.shape_cast %26 : vector<400xf32> to vector<1x400xf32>
    %28 = vector.shape_cast %27 : vector<1x400xf32> to vector<1x1x400xf32>
    %c0_22 = arith.constant 0 : index
    %c0_23 = arith.constant 0 : index
    %c0_24 = arith.constant 0 : index
    %29 = vector.load %arg5[%c0_22, %c0_23, %c0_24] : memref<1x1x400xf32, #tpu.memory_space<vmem>>, vector<1x1x400xf32>
    tpu.vector_store %arg5[%c0_22, %c0_23, %c0_24], %28 {strides = array<i32>} : memref<1x1x400xf32, #tpu.memory_space<vmem>>, vector<1x1x400xf32>,
    %30 = arith.mulf %20, %20 : vector<8x400xf32>
    %cst_25 = arith.constant dense<0.000000e+00> : vector<400xf32>
    %31 = vector.multi_reduction <add>, %30, %cst_25 [0] : vector<8x400xf32> to vector<400xf32>
    %32 = vector.shape_cast %31 : vector<400xf32> to vector<1x400xf32>
    %33 = vector.shape_cast %32 : vector<1x400xf32> to vector<1x1x400xf32>
    %c0_26 = arith.constant 0 : index
    %c0_27 = arith.constant 0 : index
    %c0_28 = arith.constant 0 : index
    %34 = vector.load %arg6[%c0_26, %c0_27, %c0_28] : memref<1x1x400xf32, #tpu.memory_space<vmem>>, vector<1x1x400xf32>
    tpu.vector_store %arg6[%c0_26, %c0_27, %c0_28], %33 {strides = array<i32>} : memref<1x1x400xf32, #tpu.memory_space<vmem>>, vector<1x1x400xf32>,
    return
  }
  func.func @transform_0(%arg0: i32) -> (i32, i32, i32) {
    %c0_i32 = arith.constant 0 : i32
    %c0_i32_0 = arith.constant 0 : i32
    %c0_i32_1 = arith.constant 0 : i32
    return %arg0, %c0_i32, %c0_i32_0 : i32, i32, i32
  }
  func.func @transform_1(%arg0: i32) -> (i32, i32, i32) {
    %c0_i32 = arith.constant 0 : i32
    %c0_i32_0 = arith.constant 0 : i32
    %c0_i32_1 = arith.constant 0 : i32
    %c0_i32_2 = arith.constant 0 : i32
    return %c0_i32, %c0_i32_0, %c0_i32_1 : i32, i32, i32
  }
  func.func @transform_2(%arg0: i32) -> (i32, i32) {
    %c0_i32 = arith.constant 0 : i32
    %c0_i32_0 = arith.constant 0 : i32
    %c0_i32_1 = arith.constant 0 : i32
    return %c0_i32, %c0_i32_0 : i32, i32
  }
  func.func @transform_3(%arg0: i32) -> (i32, i32, i32) {
    %c0_i32 = arith.constant 0 : i32
    %c0_i32_0 = arith.constant 0 : i32
    %c0_i32_1 = arith.constant 0 : i32
    return %arg0, %c0_i32, %c0_i32_0 : i32, i32, i32
  }
  func.func @transform_4(%arg0: i32) -> (i32, i32, i32) {
    %c0_i32 = arith.constant 0 : i32
    %c0_i32_0 = arith.constant 0 : i32
    %c0_i32_1 = arith.constant 0 : i32
    return %arg0, %c0_i32, %c0_i32_0 : i32, i32, i32
  }
  func.func @transform_5(%arg0: i32) -> (i32, i32, i32) {
    %c0_i32 = arith.constant 0 : i32
    %c0_i32_0 = arith.constant 0 : i32
    %c0_i32_1 = arith.constant 0 : i32
    return %arg0, %c0_i32, %c0_i32_0 : i32, i32, i32
  }
}

</mosaic_0001>

<bundles_post_ra>
// kernel: tpu_custom_call.1
= control target key start
LH: loop header
LB: loop body
LE: loop exit
PB: predicated region body
PF: predicated region fallthrough
CT: control target
= control target key end

     0   :  { %11 = vsyncpa [#allocation3], 0  ;;  %s3391_s0 = inlined_call_operand.vmem [shape: f32[2,10,400], index: 0, kind: input, shape index: {}]   ;;  %s3392_s1 = inlined_call_operand.hbm [shape: f32[3,400,400], index: 1, kind: input, shape index: {}]   ;;  %s3393_s2 = inlined_call_operand.hbm [shape: f32[1,400], index: 2, kind: input, shape index: {}]   ;;  %s3394_s3 = inlined_call_operand.vmem [shape: f32[2,10,400], index: 3, kind: output, shape index: {0}]   ;;  %s3395_s4 = inlined_call_operand.hbm [shape: f32[2,1,400], index: 4, kind: output, shape index: {1}]   ;;  %s3396_s5 = inlined_call_operand.hbm [shape: f32[2,1,400], index: 5, kind: output, shape index: {2}]  }
   0x1   :  { %12 = vsyncpa [#allocation6], 0 }
   0x2   :  { %13 = vsyncpa [#allocation4], 0 }
   0x3   :  { %15 = vsyncpa [#allocation4 + $0x1], 0 }
   0x4   :  { %16 = vsyncpa [#allocation9], 0 }
   0x5   :  { %18 = vsyncpa [#allocation9 + $0x1], 0  ;;  %s3069_s18 = smov 0   ;;  %s3071_s19 = smov 0  }
   0x6   :  { %s3073_s20 = smov 0   ;;  %s3075_s21 = smov 0  }
   0x7 LB: > { %s3090_s22 = sadd.s32 4294967295, %s3029_s21   ;;  %s2142_s23 = sadd.s32 4294967294, %s3029_s21   ;;  %s3029_s21 = sphi %s3075_s21, %s3416_s21   ;;  %s3025_s20 = sphi %s3073_s20, %s3415_s20   ;;  %s3021_s19 = sphi %s3071_s19, %s3414_s19   ;;  %s3017_s18 = sphi %s3069_s18, %s3413_s18  }
   0x8   : > { %s3094_s24 = sadd.s32 1, %s3029_s21   ;;  %s125_s25 = sadd.s32 1, %s3025_s20 }
   0x9   : > { %s122_s26 = ssub.s32 %s3029_s21, %s3094_s24  ;;  %p135_p0 = scmp.ne.s32.totalorder %s3025_s20, %s3021_s19 }
   0xa   : > { %p123_p1 = scmp.eq.s32.totalorder %s122_s26, 0  ;;  %p136_p2 = scmp.eq.s32.totalorder %s3090_s22, 1 }
   0xb   : > { %p141_p3 = scmp.ne.s32.totalorder %s3021_s19, %s3017_s18  ;;  %p142_p4 = scmp.eq.s32.totalorder %s2142_s23, 1 }
   0xc   : > { %s3105_s27 = scalar_select %p123_p1, %s3025_s20, %s125_s25  }
   0xd   : > { %p3107_p5 = por %p136_p2, %p135_p0  ;;  %p3111_p6 = por %p142_p4, %p141_p3 }
   0xe   : > { %p2143_p7 = scmp.ge.s32.totalorder %s3029_s21, 1  ;;  %p175_p8 = scmp.lt.s32.totalorder %s3029_s21, 3 }
   0xf   : > { %s3400_s28 = scalar_select %p3107_p5, 1, 0 }
  0x10   : > { %s3401_s29 = scalar_select %p3111_p6, 1, 0 }
  0x11   : > { %p3397_p9 = scmp.eq.s32.totalorder %s3090_s22, 0  ;;  %p3118_p10 = pnand %p2143_p7, %p175_p8 }
  0x12   : > { %s3031_s6 = smov [#allocation2]   ;;  %s3032_s9 = smov [#allocation5]  }
  0x13   : > { %s3402_s30 = scalar_select %p3118_p10, 1, 0 }
  0x14   : > { %s187_s7 = sshll.u32 %s3031_s6, 4  ;;  %p2806_p11 = pneg %p3118_p10  ;;  %s188_s7 = int_to_ptr.vmem [resolvable:$true] %s187_s7 }
  0x15   : > { %s201_s10 = sshll.u32 %s3032_s9, 4  ;;  %s2871_s13 = scalar_lea.hbm %s3392_s1, 76800  ;;  %s3130_s10 = int_to_ptr.vmem [resolvable:$true] %s201_s10 }
  0x16   : > { %p3126_p12 = pnand %p3397_p9, %p2806_p11  ;;  %p2872_p13 = scmp.ne.s32.totalorder %s3392_s1, %s2871_s13 }
  0x17   : > { %p2878_p3 = scmp.lt.u32.totalorder %s2871_s13, %s3392_s1 }
  0x18   : > { %p2873_p0 = pneg %p3126_p12 }
  0x1a   : > { %p2874_p1 = pnand %p2873_p0, %p2872_p13 }
  0x1c   : > { %p2875_p2 = pneg %p2874_p1 }
  0x1e   : > { %p2880_p4 = pnand %p2878_p3, %p2875_p2 }
  0x20   : > { %2883 = shalt.err (!%p2880_p4)
}
  0x21   : > { %s2884_s23 = scalar_lea.vmem %s188_s7, 76800  ;;  %p2892_p9 = scmp.lt.s32.totalorder %s188_s7, %s188_s7 }
  0x22   : > { %p2885_p7 = scmp.ne.s32.totalorder %s188_s7, %s2884_s23  ;;  %p2893_p6 = scmp.lt.s32.totalorder %s2884_s23, %s2884_s23 }
  0x24   : > { %p2887_p8 = pnand %p2885_p7, %p2873_p0  ;;  %p2894_p5 = por %p2893_p6, %p2892_p9 }
  0x26   : > { %p2888_p11 = pneg %p2887_p8 }
  0x28   : > { %p2895_p10 = pnand %p2894_p5, %p2888_p11 }
  0x2a   : > { %2898 = shalt.err (!%p2895_p10)
}
  0x2b   : > { %s3033_s25 = smov 512   ;;  %s3034_s26 = smov 32  }
  0x2c   : > { %2809 = dma.hbm_to_vmem [thread:$0]  (!%p3126_p12), %s3392_s1, 76800, %s188_s7, [#allocation3], %s3033_s25, %s3033_s25, %s3034_s26  }
  0x2d   : > { %s2899_s13 = scalar_lea.hbm %s3393_s2, 64 }
  0x2e   : > { %p2900_p13 = scmp.ne.s32.totalorder %s3393_s2, %s2899_s13  ;;  %p2906_p9 = scmp.lt.u32.totalorder %s2899_s13, %s3393_s2 }
  0x30   : > { %p2902_p5 = pnand %p2900_p13, %p2873_p0 }
  0x32   : > { %p2903_p6 = pneg %p2902_p5 }
  0x34   : > { %p2908_p10 = pnand %p2906_p9, %p2903_p6 }
  0x36   : > { %2911 = shalt.err (!%p2908_p10)
}
  0x37   : > { %s2912_s7 = scalar_lea.vmem %s3130_s10, 64  ;;  %p2920_p4 = scmp.lt.s32.totalorder %s3130_s10, %s3130_s10 }
  0x38   : > { %p2913_p1 = scmp.ne.s32.totalorder %s3130_s10, %s2912_s7  ;;  %p2921_p7 = scmp.lt.s32.totalorder %s2912_s7, %s2912_s7 }
  0x3a   : > { %p2915_p2 = pnand %p2913_p1, %p2873_p0  ;;  %p2922_p8 = por %p2921_p7, %p2920_p4 }
  0x3c   : > { %p2916_p3 = pneg %p2915_p2 }
  0x3e   : > { %p2923_p11 = pnand %p2922_p8, %p2916_p3 }
  0x40   : > { %2926 = shalt.err (!%p2923_p11)
}
  0x41   : > { %2812 = dma.hbm_to_vmem [thread:$0]  (!%p3126_p12), %s3393_s2, 64, %s3130_s10, [#allocation6]  }
  0x42   : > { %p3404_p13 = scmp.ne.s32.totalorder %s3402_s30, 0 }
  0x43   : > { %p3405_p5 = scmp.eq.s32.totalorder (!%p3404_p13), %s3090_s22, 0 }
  0x44   : > { %222 = sbr.rel (%p3404_p13) target bundleno = 660 (0x294), region = 32 }
  0x4b   : > { %3000 = dma.done.wait (%p3405_p5), [#allocation3], 76800   ;;  %p3406_p0 = pmov %p3405_p5 }
  0x4d   : > { %3002 = vsyncadd (%p3406_p0), [#allocation3], 4294890496  ;;  %p3407_p6 = pmov %p3406_p0 }
  0x4e   : > { %p3408_p9 = pmov %p3406_p0 }
  0x4f   : > { %3004 = dma.done.wait (%p3407_p6), [#allocation6], 64  }
  0x50   : > { %3006 = vsyncadd (%p3408_p9), [#allocation6], 4294967232  ;;  %v484_v0 = vld [vmem:[#allocation2 + $0x648] sm:$0xff]  ;;  %v486_v2 = vld [vmem:[#allocation2 + $0x658] sm:$0xff]  ;;  %p264_p12 = scmp.lt.s32.totalorder %s3090_s22, 1  ;;  %vm691_vm0 = vcmask 1046528  }
  0x51   : > { %v488_v1 = vld [vmem:[#allocation2 + $0x668] sm:$0xff]  ;;  %v490_v4 = vld [vmem:[#allocation2 + $0x678] sm:$0xff]  ;;  %v483_v5 = vld [vmem:[#allocation2 + $0x640] sm:$0xff]  ;;  %vm707_vm1 = vcmask 130048   ;;  %vm1481_vm2 = vcmask 1045504   ;;  %vm1820_vm3 = vcmask 123904  }
  0x52   : > { %v2174_v3 = vpack.c.bf16 %v488_v1, %v484_v0  ;;  %v487_v6 = vld [vmem:[#allocation2 + $0x660] sm:$0xff]  ;;  %v2274_v7 = vpack.c.bf16 %v490_v4, %v486_v2  ;;  %v485_v9 = vld [vmem:[#allocation2 + $0x650] sm:$0xff]  ;;  %v492_v11 = vld [vmem:[#allocation2 + $0x688] sm:$0xff]  ;;  %s3193_s30 = scalar_select %p264_p12, %s3090_s22, 1  ;;  %vm1837_vm4 = vcmask 130049   ;;  %vm1842_vm5 = vcmask 122880  }
  0x53   : > { %v2176_v8 = vpack.c.bf16 %v487_v6, %v483_v5  ;;  %v489_v10 = vld [vmem:[#allocation2 + $0x670] sm:$0xff]  ;;  %v496_v13 = vld [vmem:[#allocation2 + $0x6a8] sm:$0xff]  ;;  %v494_v14 = vld [vmem:[#allocation2 + $0x698] sm:$0xff]  ;;  %s3292_s13 = sand.u32 1, %s3021_s19   ;;  %s2172_s15 = sshll.u32 %s3090_s22, 6 }
  0x54   : > { %2175 = vmatprep.subr.bf16.mxu0 %v2174_v3  ;;  %v2276_v12 = vpack.c.bf16 %v489_v10, %v485_v9  ;;  %v498_v15 = vld [vmem:[#allocation2 + $0x6b8] sm:$0xff]  ;;  %2275 = vmatprep.subr.bf16.mxu1 %v2274_v7  ;;  %v2178_v16 = vpack.c.bf16 %v496_v13, %v492_v11  ;;  %v491_v18 = vld [vmem:[#allocation2 + $0x680] sm:$0xff]  ;;  %v493_v20 = vld [vmem:[#allocation2 + $0x690] sm:$0xff]  ;;  %s2170_s8 = sshll.u32 %s3193_s30, 6  ;;  %s2150_s14 = sshll.u32 %s3292_s13, 2 }
  0x55   : > { %2177 = vmatpush1.bf16.msra.mxu0 %v2176_v8  ;;  %v2278_v17 = vpack.c.bf16 %v498_v15, %v494_v14  ;;  %v495_v19 = vld [vmem:[#allocation2 + $0x6a0] sm:$0xff]  ;;  %v497_v22 = vld [vmem:[#allocation2 + $0x6b0] sm:$0xff]  ;;  %v500_v23 = vld [vmem:[#allocation2 + $0x6c8] sm:$0xff]  ;;  %s3201_s6 = scalar_lea.vmem %s3391_s0, %s2170_s8  ;;  %s3258_s12 = scalar_lea.vmem %s3394_s3, %s2170_s8 }
  0x56   : > { %2277 = vmatpush1.bf16.msra.mxu1 %v2276_v12  ;;  %v2180_v21 = vpack.c.bf16 %v495_v19, %v491_v18  ;;  %v504_v24 = vld [vmem:[#allocation2 + $0x6e8] sm:$0xff]  ;;  %2179 = vmatprep.subr.bf16.mxu0 %v2178_v16  ;;  %v2280_v25 = vpack.c.bf16 %v497_v22, %v493_v20  ;;  %v502_v27 = vld [vmem:[#allocation2 + $0x6d8] sm:$0xff]  ;;  %v499_v29 = vld [vmem:[#allocation2 + $0x6c0] sm:$0xff]  ;;  %s256_s16 = scalar_lea.vmem [#allocation7], %s2150_s14  ;;  %s3307_s25 = scalar_lea.hbm %s3395_s4, %s2172_s15 }
  0x57   : > { %2279 = vmatprep.subr.bf16.mxu1 %v2278_v17  ;;  %v2182_v26 = vpack.c.bf16 %v504_v24, %v500_v23  ;;  %v506_v28 = vld [vmem:[#allocation2 + $0x6f8] sm:$0xff]  ;;  %v503_v31 = vld [vmem:[#allocation2 + $0x6e0] sm:$0xff]  ;;  %v501_v32 = vld [vmem:[#allocation2 + $0x6d0] sm:$0xff]  ;;  %s1990_s17 = sshll.u32 %s256_s16, 4  ;;  %s3311_s30 = scalar_lea.vmem [#allocation8], %s2150_s14  ;;  %s3309_s17 = int_to_ptr.vmem [resolvable:$true] %s1990_s17 }
  0x58   : > { %v2282_v30 = vpack.c.bf16 %v506_v28, %v502_v27  ;;  %v505_v33 = vld [vmem:[#allocation2 + $0x6f0] sm:$0xff]  ;;  %v2184_v34 = vpack.c.bf16 %v503_v31, %v499_v29  ;;  %v508_v35 = vld [vmem:[#allocation2 + $0x708] sm:$0xff]  ;;  %v510_v37 = vld [vmem:[#allocation2 + $0x718] sm:$0xff]  ;;  %s2004_s8 = sshll.u32 %s3311_s30, 4  ;;  %s1968_s10 = scalar_lea.sflag [#allocation4], %s3292_s13  ;;  %s3347_s8 = int_to_ptr.vmem [resolvable:$true] %s2004_s8 }
  0x59   : > { %2181 = vmatpush1.bf16.msra.mxu0 %v2180_v21  ;;  %v512_v36 = vld [vmem:[#allocation2 + $0x728] sm:$0xff]  ;;  %v2284_v38 = vpack.c.bf16 %v505_v33, %v501_v32  ;;  %v514_v40 = vld [vmem:[#allocation2 + $0x738] sm:$0xff]  ;;  %v507_v41 = vld [vmem:[#allocation2 + $0x700] sm:$0xff]  ;;  %s2927_s26 = scalar_lea.vmem %s3309_s17, 64  ;;  %p3411_p1 = scmp.ne.s32.totalorder %s3400_s28, 0 }
  0x5a   : > { %2281 = vmatpush1.bf16.msra.mxu1 %v2280_v25  ;;  %2183 = vmatprep.subr.bf16.mxu0 %v2182_v26  ;;  %v2186_v39 = vpack.c.bf16 %v512_v36, %v508_v35  ;;  %v511_v42 = vld [vmem:[#allocation2 + $0x720] sm:$0xff]  ;;  %v2286_v43 = vpack.c.bf16 %v514_v40, %v510_v37  ;;  %v509_v44 = vld [vmem:[#allocation2 + $0x710] sm:$0xff]  ;;  %v516_v46 = vld [vmem:[#allocation2 + $0x748] sm:$0xff]  ;;  %p2928_p10 = scmp.ne.s32.totalorder %s3309_s17, %s2927_s26 }
  0x5b   : > { %2283 = vmatprep.subr.bf16.mxu1 %v2282_v30  ;;  %v513_v45 = vld [vmem:[#allocation2 + $0x730] sm:$0xff]  ;;  %v520_v47 = vld [vmem:[#allocation2 + $0x768] sm:$0xff]  ;;  %v518_v48 = vld [vmem:[#allocation2 + $0x758] sm:$0xff]  ;;  %v2188_v50 = vpack.c.bf16 %v511_v42, %v507_v41 }
  0x5c   : > { %v522_v49 = vld [vmem:[#allocation2 + $0x778] sm:$0xff]  ;;  %v2288_v51 = vpack.c.bf16 %v513_v45, %v509_v44  ;;  %v2190_v52 = vpack.c.bf16 %v520_v47, %v516_v46  ;;  %v515_v53 = vld [vmem:[#allocation2 + $0x740] sm:$0xff]  ;;  %v517_v55 = vld [vmem:[#allocation2 + $0x750] sm:$0xff]  ;;  %p2929_p2 = pnand %p2928_p10, %p3411_p1 }
  0x5d   : > { %2185 = vmatpush1.bf16.msra.mxu0 %v2184_v34  ;;  %v519_v54 = vld [vmem:[#allocation2 + $0x760] sm:$0xff]  ;;  %v2290_v56 = vpack.c.bf16 %v522_v49, %v518_v48  ;;  %v521_v57 = vld [vmem:[#allocation2 + $0x770] sm:$0xff]  ;;  %v524_v58 = vld [vmem:[#allocation2 + $0x788] sm:$0xff] }
  0x5e   : > { %2285 = vmatpush1.bf16.msra.mxu1 %v2284_v38  ;;  %2187 = vmatprep.subr.bf16.mxu0 %v2186_v39  ;;  %v528_v59 = vld [vmem:[#allocation2 + $0x7a8] sm:$0xff]  ;;  %v526_v60 = vld [vmem:[#allocation2 + $0x798] sm:$0xff]  ;;  %v2192_v62 = vpack.c.bf16 %v519_v54, %v515_v53  ;;  %v2292_v63 = vpack.c.bf16 %v521_v57, %v517_v55  ;;  %v523_v1 = vld [vmem:[#allocation2 + $0x780] sm:$0xff]  ;;  %p2930_p3 = pneg %p2929_p2 }
  0x5f   : > { %2287 = vmatprep.subr.bf16.mxu1 %v2286_v43  ;;  %v530_v61 = vld [vmem:[#allocation2 + $0x7b8] sm:$0xff]  ;;  %v2194_v0 = vpack.c.bf16 %v528_v59, %v524_v58  ;;  %v527_v2 = vld [vmem:[#allocation2 + $0x7a0] sm:$0xff]  ;;  %v525_v3 = vld [vmem:[#allocation2 + $0x790] sm:$0xff] }
  0x60   : > { %v2294_v4 = vpack.c.bf16 %v530_v61, %v526_v60  ;;  %v529_v5 = vld [vmem:[#allocation2 + $0x7b0] sm:$0xff]  ;;  %v532_v6 = vld [vmem:[#allocation2 + $0x7c8] sm:$0xff]  ;;  %v534_v8 = vld [vmem:[#allocation2 + $0x7d8] sm:$0xff]  ;;  %v2196_v10 = vpack.c.bf16 %v527_v2, %v523_v1 }
  0x61   : > { %2189 = vmatpush1.bf16.msra.mxu0 %v2188_v50  ;;  %v536_v7 = vld [vmem:[#allocation2 + $0x7e8] sm:$0xff]  ;;  %v538_v9 = vld [vmem:[#allocation2 + $0x7f8] sm:$0xff]  ;;  %v2296_v11 = vpack.c.bf16 %v529_v5, %v525_v3  ;;  %v531_v13 = vld [vmem:[#allocation2 + $0x7c0] sm:$0xff] }
  0x62   : > { %2289 = vmatpush1.bf16.msra.mxu1 %v2288_v51  ;;  %2191 = vmatprep.subr.bf16.mxu0 %v2190_v52  ;;  %v2198_v12 = vpack.c.bf16 %v536_v7, %v532_v6  ;;  %v535_v14 = vld [vmem:[#allocation2 + $0x7e0] sm:$0xff]  ;;  %v533_v15 = vld [vmem:[#allocation2 + $0x7d0] sm:$0xff]  ;;  %v2298_v16 = vpack.c.bf16 %v538_v9, %v534_v8  ;;  %v540_v18 = vld [vmem:[#allocation2 + $0x808] sm:$0xff] }
  0x63   : > { %2291 = vmatprep.subr.bf16.mxu1 %v2290_v56  ;;  %v537_v17 = vld [vmem:[#allocation2 + $0x7f0] sm:$0xff]  ;;  %v544_v19 = vld [vmem:[#allocation2 + $0x828] sm:$0xff]  ;;  %v542_v20 = vld [vmem:[#allocation2 + $0x818] sm:$0xff]  ;;  %v2200_v22 = vpack.c.bf16 %v535_v14, %v531_v13 }
  0x64   : > { %v546_v21 = vld [vmem:[#allocation2 + $0x838] sm:$0xff]  ;;  %v2300_v23 = vpack.c.bf16 %v537_v17, %v533_v15  ;;  %v2202_v24 = vpack.c.bf16 %v544_v19, %v540_v18  ;;  %v539_v25 = vld [vmem:[#allocation2 + $0x800] sm:$0xff]  ;;  %v541_v27 = vld [vmem:[#allocation2 + $0x810] sm:$0xff] }
  0x65   : > { %2193 = vmatpush1.bf16.msra.mxu0 %v2192_v62  ;;  %v543_v26 = vld [vmem:[#allocation2 + $0x820] sm:$0xff]  ;;  %v2302_v28 = vpack.c.bf16 %v546_v21, %v542_v20  ;;  %v545_v29 = vld [vmem:[#allocation2 + $0x830] sm:$0xff]  ;;  %v548_v30 = vld [vmem:[#allocation2 + $0x848] sm:$0xff] }
  0x66   : > { %2293 = vmatpush1.bf16.msra.mxu1 %v2292_v63  ;;  %2195 = vmatprep.subr.bf16.mxu0 %v2194_v0  ;;  %v552_v31 = vld [vmem:[#allocation2 + $0x868] sm:$0xff]  ;;  %v550_v32 = vld [vmem:[#allocation2 + $0x858] sm:$0xff]  ;;  %v2204_v34 = vpack.c.bf16 %v543_v26, %v539_v25  ;;  %v2304_v35 = vpack.c.bf16 %v545_v29, %v541_v27  ;;  %v547_v37 = vld [vmem:[#allocation2 + $0x840] sm:$0xff] }
  0x67   : > { %2295 = vmatprep.subr.bf16.mxu1 %v2294_v4  ;;  %v554_v33 = vld [vmem:[#allocation2 + $0x878] sm:$0xff]  ;;  %v2206_v36 = vpack.c.bf16 %v552_v31, %v548_v30  ;;  %v551_v38 = vld [vmem:[#allocation2 + $0x860] sm:$0xff]  ;;  %v549_v39 = vld [vmem:[#allocation2 + $0x850] sm:$0xff] }
  0x68   : > { %v2306_v40 = vpack.c.bf16 %v554_v33, %v550_v32  ;;  %v553_v41 = vld [vmem:[#allocation2 + $0x870] sm:$0xff]  ;;  %v556_v42 = vld [vmem:[#allocation2 + $0x888] sm:$0xff]  ;;  %v558_v44 = vld [vmem:[#allocation2 + $0x898] sm:$0xff]  ;;  %v2208_v46 = vpack.c.bf16 %v551_v38, %v547_v37 }
  0x69   : > { %2197 = vmatpush1.bf16.msra.mxu0 %v2196_v10  ;;  %v560_v43 = vld [vmem:[#allocation2 + $0x8a8] sm:$0xff]  ;;  %v562_v45 = vld [vmem:[#allocation2 + $0x8b8] sm:$0xff]  ;;  %v2308_v47 = vpack.c.bf16 %v553_v41, %v549_v39  ;;  %v555_v49 = vld [vmem:[#allocation2 + $0x880] sm:$0xff] }
  0x6a   : > { %2297 = vmatpush1.bf16.msra.mxu1 %v2296_v11  ;;  %2199 = vmatprep.subr.bf16.mxu0 %v2198_v12  ;;  %v2210_v48 = vpack.c.bf16 %v560_v43, %v556_v42  ;;  %v559_v50 = vld [vmem:[#allocation2 + $0x8a0] sm:$0xff]  ;;  %v557_v51 = vld [vmem:[#allocation2 + $0x890] sm:$0xff]  ;;  %v2310_v52 = vpack.c.bf16 %v562_v45, %v558_v44  ;;  %v564_v54 = vld [vmem:[#allocation2 + $0x8c8] sm:$0xff] }
  0x6b   : > { %2299 = vmatprep.subr.bf16.mxu1 %v2298_v16  ;;  %v561_v53 = vld [vmem:[#allocation2 + $0x8b0] sm:$0xff]  ;;  %v568_v55 = vld [vmem:[#allocation2 + $0x8e8] sm:$0xff]  ;;  %v566_v56 = vld [vmem:[#allocation2 + $0x8d8] sm:$0xff]  ;;  %v2212_v58 = vpack.c.bf16 %v559_v50, %v555_v49 }
  0x6c   : > { %v570_v57 = vld [vmem:[#allocation2 + $0x8f8] sm:$0xff]  ;;  %v2312_v59 = vpack.c.bf16 %v561_v53, %v557_v51  ;;  %v2214_v60 = vpack.c.bf16 %v568_v55, %v564_v54  ;;  %v563_v61 = vld [vmem:[#allocation2 + $0x8c0] sm:$0xff]  ;;  %v565_v63 = vld [vmem:[#allocation2 + $0x8d0] sm:$0xff] }
  0x6d   : > { %2201 = vmatpush1.bf16.msra.mxu0 %v2200_v22  ;;  %v567_v62 = vld [vmem:[#allocation2 + $0x8e0] sm:$0xff]  ;;  %v2314_v0 = vpack.c.bf16 %v570_v57, %v566_v56  ;;  %v569_v1 = vld [vmem:[#allocation2 + $0x8f0] sm:$0xff]  ;;  %v572_v2 = vld [vmem:[#allocation2 + $0x908] sm:$0xff] }
  0x6e   : > { %2301 = vmatpush1.bf16.msra.mxu1 %v2300_v23  ;;  %2203 = vmatprep.subr.bf16.mxu0 %v2202_v24  ;;  %v576_v3 = vld [vmem:[#allocation2 + $0x928] sm:$0xff]  ;;  %v574_v4 = vld [vmem:[#allocation2 + $0x918] sm:$0xff]  ;;  %v2216_v6 = vpack.c.bf16 %v567_v62, %v563_v61  ;;  %v571_v7 = vld [vmem:[#allocation2 + $0x900] sm:$0xff]  ;;  %v2316_v8 = vpack.c.bf16 %v569_v1, %v565_v63 }
  0x6f   : > { %2303 = vmatprep.subr.bf16.mxu1 %v2302_v28  ;;  %v578_v5 = vld [vmem:[#allocation2 + $0x938] sm:$0xff]  ;;  %v2218_v9 = vpack.c.bf16 %v576_v3, %v572_v2  ;;  %v575_v10 = vld [vmem:[#allocation2 + $0x920] sm:$0xff]  ;;  %v573_v11 = vld [vmem:[#allocation2 + $0x910] sm:$0xff] }
  0x70   : > { %v577_v12 = vld [vmem:[#allocation2 + $0x930] sm:$0xff]  ;;  %v2318_v13 = vpack.c.bf16 %v578_v5, %v574_v4  ;;  %v580_v14 = vld [vmem:[#allocation2 + $0x948] sm:$0xff]  ;;  %v582_v17 = vld [vmem:[#allocation2 + $0x958] sm:$0xff]  ;;  %v2220_v21 = vpack.c.bf16 %v575_v10, %v571_v7 }
  0x71   : > { %2205 = vmatpush1.bf16.msra.mxu0 %v2204_v34  ;;  %v584_v15 = vld [vmem:[#allocation2 + $0x968] sm:$0xff]  ;;  %v586_v18 = vld [vmem:[#allocation2 + $0x978] sm:$0xff]  ;;  %v2320_v23 = vpack.c.bf16 %v577_v12, %v573_v11  ;;  %v579_v25 = vld [vmem:[#allocation2 + $0x940] sm:$0xff] }
  0x72   : > { %2305 = vmatpush1.bf16.msra.mxu1 %v2304_v35  ;;  %2207 = vmatprep.subr.bf16.mxu0 %v2206_v36  ;;  %v3204_v16 = vld [vmem:[%s3201_s6 + $0x8] sm:$0xff]  ;;  %v2222_v24 = vpack.c.bf16 %v584_v15, %v580_v14  ;;  %v583_v26 = vld [vmem:[#allocation2 + $0x960] sm:$0xff]  ;;  %v581_v27 = vld [vmem:[#allocation2 + $0x950] sm:$0xff]  ;;  %v2322_v28 = vpack.c.bf16 %v586_v18, %v582_v17 }
  0x73   : > { %2307 = vmatprep.subr.bf16.mxu1 %v2306_v40  ;;  %v279_v19 = vld [vmem:[%s3201_s6 + $0x28] sm:$0x3]  ;;  %v695_v20 = vrot.slane %v3204_v16, 1  ;;  %v585_v29 = vld [vmem:[#allocation2 + $0x970] sm:$0xff]  ;;  %v590_v33 = vld [vmem:[#allocation2 + $0x998] sm:$0xff]  ;;  %v2224_v35 = vpack.c.bf16 %v583_v26, %v579_v25 }
  0x74   : > { %v696_v22 = vrot.slane %v279_v19, 1  ;;  %v588_v30 = vld [vmem:[#allocation2 + $0x988] sm:$0xff]  ;;  %v594_v34 = vld [vmem:[#allocation2 + $0x9b8] sm:$0xff]  ;;  %v2324_v36 = vpack.c.bf16 %v585_v29, %v581_v27  ;;  %v587_v38 = vld [vmem:[#allocation2 + $0x980] sm:$0xff] }
  0x75   : > { %2209 = vmatpush1.bf16.msra.mxu0 %v2208_v46  ;;  %v592_v31 = vld [vmem:[#allocation2 + $0x9a8] sm:$0xff]  ;;  %v591_v39 = vld [vmem:[#allocation2 + $0x9a0] sm:$0xff]  ;;  %v589_v40 = vld [vmem:[#allocation2 + $0x990] sm:$0xff]  ;;  %v2326_v41 = vpack.c.bf16 %v594_v34, %v590_v33 }
  0x76   : > { %2309 = vmatpush1.bf16.msra.mxu1 %v2308_v47  ;;  %2211 = vmatprep.subr.bf16.mxu0 %v2210_v48  ;;  %v697_v32 = vsel %vm691_vm0, %v695_v20, %v696_v22  ;;  %v2226_v37 = vpack.c.bf16 %v592_v31, %v588_v30  ;;  %v593_v42 = vld [vmem:[#allocation2 + $0x9b0] sm:$0xff]  ;;  %v596_v43 = vld [vmem:[#allocation2 + $0x9c8] sm:$0xff]  ;;  %v598_v45 = vld [vmem:[#allocation2 + $0x9d8] sm:$0xff]  ;;  %v2228_v47 = vpack.c.bf16 %v591_v39, %v587_v38 }
  0x77   : > { %2311 = vmatprep.subr.bf16.mxu1 %v2310_v52  ;;  %774 = vmatprep.mubr.f32.mxu0 %v697_v32  ;;  %v600_v44 = vld [vmem:[#allocation2 + $0x9e8] sm:$0xff]  ;;  %v602_v46 = vld [vmem:[#allocation2 + $0x9f8] sm:$0xff]  ;;  %v2328_v48 = vpack.c.bf16 %v593_v42, %v589_v40  ;;  %v595_v50 = vld [vmem:[#allocation2 + $0x9c0] sm:$0xff] }
  0x78   : > { %916 = vmatprep.mubr.f32.mxu1 %v697_v32  ;;  %v2230_v49 = vpack.c.bf16 %v600_v44, %v596_v43  ;;  %v599_v51 = vld [vmem:[#allocation2 + $0x9e0] sm:$0xff]  ;;  %v597_v52 = vld [vmem:[#allocation2 + $0x9d0] sm:$0xff]  ;;  %v2330_v53 = vpack.c.bf16 %v602_v46, %v598_v45  ;;  %v604_v55 = vld [vmem:[#allocation2 + $0xa08] sm:$0xff] }
  0x79   : > { %2213 = vmatpush1.bf16.msra.mxu0 %v2212_v58  ;;  %v601_v54 = vld [vmem:[#allocation2 + $0x9f0] sm:$0xff]  ;;  %v608_v56 = vld [vmem:[#allocation2 + $0xa28] sm:$0xff]  ;;  %v606_v57 = vld [vmem:[#allocation2 + $0xa18] sm:$0xff] }
  0x7a   : > { %2313 = vmatpush1.bf16.msra.mxu1 %v2312_v59  ;;  %2215 = vmatprep.subr.bf16.mxu0 %v2214_v60  ;;  %v610_v58 = vld [vmem:[#allocation2 + $0xa38] sm:$0xff]  ;;  %v2232_v59 = vpack.c.bf16 %v599_v51, %v595_v50  ;;  %v603_v60 = vld [vmem:[#allocation2 + $0xa00] sm:$0xff]  ;;  %v2332_v62 = vpack.c.bf16 %v601_v54, %v597_v52  ;;  %v2234_v63 = vpack.c.bf16 %v608_v56, %v604_v55  ;;  %v609_v4 = vld [vmem:[#allocation2 + $0xa30] sm:$0xff] }
  0x7b   : > { %2315 = vmatprep.subr.bf16.mxu1 %v2314_v0  ;;  %v607_v61 = vld [vmem:[#allocation2 + $0xa20] sm:$0xff]  ;;  %v605_v0 = vld [vmem:[#allocation2 + $0xa10] sm:$0xff]  ;;  %v2334_v3 = vpack.c.bf16 %v610_v58, %v606_v57  ;;  %v612_v5 = vld [vmem:[#allocation2 + $0xa48] sm:$0xff] }
  0x7c   : > { %v3210_v1 = vld [vmem:[%s3201_s6] sm:$0xff]  ;;  %v614_v7 = vld [vmem:[#allocation2 + $0xa58] sm:$0xff]  ;;  %v2336_v12 = vpack.c.bf16 %v609_v4, %v605_v0  ;;  %v613_v17 = vld [vmem:[#allocation2 + $0xa50] sm:$0xff] }
  0x7d   : > { %2217 = vmatpush1.bf16.msra.mxu0 %v2216_v6  ;;  %v278_v2 = vld [vmem:[%s3201_s6 + $0x20] sm:$0x3]  ;;  %v616_v6 = vld [vmem:[#allocation2 + $0xa68] sm:$0xff]  ;;  %v692_v10 = vrot.slane %v3210_v1, 1  ;;  %v617_v19 = vld [vmem:[#allocation2 + $0xa70] sm:$0xff] }
  0x7e   : > { %2317 = vmatpush1.bf16.msra.mxu1 %v2316_v8  ;;  %2219 = vmatprep.subr.bf16.mxu0 %v2218_v9  ;;  %v618_v8 = vld [vmem:[#allocation2 + $0xa78] sm:$0xff]  ;;  %v2236_v9 = vpack.c.bf16 %v607_v61, %v603_v60  ;;  %v693_v11 = vrot.slane %v278_v2, 1  ;;  %v611_v14 = vld [vmem:[#allocation2 + $0xa40] sm:$0xff]  ;;  %v620_v20 = vld [vmem:[#allocation2 + $0xa88] sm:$0xff]  ;;  %v2340_v26 = vpack.c.bf16 %v617_v19, %v613_v17 }
  0x7f   : > { %2319 = vmatprep.subr.bf16.mxu1 %v2318_v13  ;;  %v2238_v13 = vpack.c.bf16 %v616_v6, %v612_v5  ;;  %v615_v15 = vld [vmem:[#allocation2 + $0xa60] sm:$0xff]  ;;  %v2338_v18 = vpack.c.bf16 %v618_v8, %v614_v7  ;;  %v622_v22 = vld [vmem:[#allocation2 + $0xa98] sm:$0xff]  ;;  %v621_v30 = vld [vmem:[#allocation2 + $0xa90] sm:$0xff] }
  0x80   : > { %v2240_v25 = vpack.c.bf16 %v615_v15, %v611_v14  ;;  %v623_v29 = vld [vmem:[#allocation2 + $0xaa0] sm:$0xff]  ;;  %v625_v32 = vld [vmem:[#allocation2 + $0xab0] sm:$0xff]  ;;  %v628_v33 = vld [vmem:[#allocation2 + $0xac8] sm:$0xff] }
  0x81   : > { %2221 = vmatpush1.bf16.msra.mxu0 %v2220_v21  ;;  %v624_v21 = vld [vmem:[#allocation2 + $0xaa8] sm:$0xff]  ;;  %v3216_v38 = vld [vmem:[%s3201_s6 + $0x18] sm:$0xff]  ;;  %v2344_v40 = vpack.c.bf16 %v625_v32, %v621_v30  ;;  %v627_v42 = vld [vmem:[#allocation2 + $0xac0] sm:$0xff] }
  0x82   : > { %2321 = vmatpush1.bf16.msra.mxu1 %v2320_v23  ;;  %2223 = vmatprep.subr.bf16.mxu0 %v2222_v24  ;;  %v626_v23 = vld [vmem:[#allocation2 + $0xab8] sm:$0xff]  ;;  %v694_v24 = vsel %vm691_vm0, %v692_v10, %v693_v11  ;;  %v2242_v27 = vpack.c.bf16 %v624_v21, %v620_v20  ;;  %v632_v34 = vld [vmem:[#allocation2 + $0xae8] sm:$0xff]  ;;  %v631_v43 = vld [vmem:[#allocation2 + $0xae0] sm:$0xff]  ;;  %v701_v45 = vrot.slane %v3216_v38, 1 }
  0x83   : > { %2323 = vmatprep.subr.bf16.mxu1 %v2322_v28  ;;  %v619_v28 = vld [vmem:[#allocation2 + $0xa80] sm:$0xff]  ;;  %v2342_v31 = vpack.c.bf16 %v626_v23, %v622_v22  ;;  %v281_v39 = vld [vmem:[%s3201_s6 + $0x38] sm:$0x3]  ;;  %v629_v44 = vld [vmem:[#allocation2 + $0xad0] sm:$0xff]  ;;  %v2248_v54 = vpack.c.bf16 %v631_v43, %v627_v42 }
  0x84   : > { %v702_v46 = vrot.slane %v281_v39, 1  ;;  %v640_v50 = vld [vmem:[#allocation2 + $0xb28] sm:$0xff]  ;;  %v638_v51 = vld [vmem:[#allocation2 + $0xb18] sm:$0xff]  ;;  %v635_v57 = vld [vmem:[#allocation2 + $0xb00] sm:$0xff] }
  0x85   : > { %2225 = vmatpush1.bf16.msra.mxu0 %v2224_v35  ;;  %v630_v35 = vld [vmem:[#allocation2 + $0xad8] sm:$0xff]  ;;  %v639_v58 = vld [vmem:[#allocation2 + $0xb20] sm:$0xff]  ;;  %v641_v61 = vld [vmem:[#allocation2 + $0xb30] sm:$0xff] }
  0x86   : > { %2325 = vmatpush1.bf16.msra.mxu1 %v2324_v36  ;;  %2227 = vmatprep.subr.bf16.mxu0 %v2226_v37  ;;  %v634_v36 = vld [vmem:[#allocation2 + $0xaf8] sm:$0xff]  ;;  %v2244_v37 = vpack.c.bf16 %v623_v29, %v619_v28  ;;  %v643_v6 = vld [vmem:[#allocation2 + $0xb40] sm:$0xff]  ;;  %v645_v8 = vld [vmem:[#allocation2 + $0xb50] sm:$0xff] }
  0x87   : > { %2327 = vmatprep.subr.bf16.mxu1 %v2326_v41  ;;  %v2246_v41 = vpack.c.bf16 %v632_v34, %v628_v33  ;;  %v642_v52 = vld [vmem:[#allocation2 + $0xb38] sm:$0xff]  ;;  %v647_v7 = vld [vmem:[#allocation2 + $0xb60] sm:$0xff]  ;;  %v649_v10 = vld [vmem:[#allocation2 + $0xb70] sm:$0xff] }
  0x88   : > { %v2350_v60 = vpack.c.bf16 %v642_v52, %v638_v51  ;;  %v646_v0 = vld [vmem:[#allocation2 + $0xb58] sm:$0xff]  ;;  %v652_v11 = vld [vmem:[#allocation2 + $0xb88] sm:$0xff]  ;;  %v2256_v15 = vpack.c.bf16 %v647_v7, %v643_v6  ;;  %v2356_v17 = vpack.c.bf16 %v649_v10, %v645_v8  ;;  %v651_v19 = vld [vmem:[#allocation2 + $0xb80] sm:$0xff] }
  0x89   : > { %2229 = vmatpush1.bf16.msra.mxu0 %v2228_v47  ;;  %v2346_v47 = vpack.c.bf16 %v634_v36, %v630_v35  ;;  %v650_v2 = vld [vmem:[#allocation2 + $0xb78] sm:$0xff]  ;;  %v655_v20 = vld [vmem:[#allocation2 + $0xba0] sm:$0xff]  ;;  %v653_v21 = vld [vmem:[#allocation2 + $0xb90] sm:$0xff] }
  0x8a   : > { %2329 = vmatpush1.bf16.msra.mxu1 %v2328_v48  ;;  %2231 = vmatprep.subr.bf16.mxu0 %v2230_v49  ;;  %v633_v48 = vld [vmem:[#allocation2 + $0xaf0] sm:$0xff]  ;;  %v636_v49 = vld [vmem:[#allocation2 + $0xb08] sm:$0xff]  ;;  %v658_v14 = vld [vmem:[#allocation2 + $0xbb8] sm:$0xff]  ;;  %v2260_v28 = vpack.c.bf16 %v655_v20, %v651_v19 }
  0x8b   : > { %2331 = vmatprep.subr.bf16.mxu1 %v2330_v53  ;;  %v703_v53 = vsel %vm691_vm0, %v701_v45, %v702_v46  ;;  %v2348_v55 = vpack.c.bf16 %v633_v48, %v629_v44  ;;  %v2250_v56 = vpack.c.bf16 %v640_v50, %v636_v49  ;;  %v657_v23 = vld [vmem:[#allocation2 + $0xbb0] sm:$0xff]  ;;  %v663_v32 = vld [vmem:[#allocation2 + $0xbe0] sm:$0xff]  ;;  %v668_v36 = vld [vmem:[#allocation2 + $0xc08] sm:$0xff] }
  0x8c   : > { %v2360_v29 = vpack.c.bf16 %v657_v23, %v653_v21  ;;  %v661_v33 = vld [vmem:[#allocation2 + $0xbd0] sm:$0xff]  ;;  %v670_v39 = vld [vmem:[#allocation2 + $0xc18] sm:$0xff]  ;;  %v667_v44 = vld [vmem:[#allocation2 + $0xc00] sm:$0xff] }
  0x8d   : > { %2233 = vmatpush1.bf16.msra.mxu0 %v2232_v59  ;;  %v637_v59 = vld [vmem:[#allocation2 + $0xb10] sm:$0xff]  ;;  %v671_v45 = vld [vmem:[#allocation2 + $0xc20] sm:$0xff]  ;;  %v676_v49 = vld [vmem:[#allocation2 + $0xc48] sm:$0xff] }
  0x8e   : > { %2333 = vmatpush1.bf16.msra.mxu1 %v2332_v62  ;;  %2235 = vmatprep.subr.bf16.mxu0 %v2234_v63  ;;  %v644_v62 = vld [vmem:[#allocation2 + $0xb48] sm:$0xff]  ;;  %v2352_v4 = vpack.c.bf16 %v641_v61, %v637_v59  ;;  %v665_v35 = vld [vmem:[#allocation2 + $0xbf0] sm:$0xff]  ;;  %v678_v51 = vld [vmem:[#allocation2 + $0xc58] sm:$0xff] }
  0x8f   : > { %2335 = vmatprep.subr.bf16.mxu1 %v2334_v3  ;;  %v648_v63 = vld [vmem:[#allocation2 + $0xb68] sm:$0xff]  ;;  %v2252_v3 = vpack.c.bf16 %v639_v58, %v635_v57  ;;  %v2364_v42 = vpack.c.bf16 %v665_v35, %v661_v33  ;;  %v669_v46 = vld [vmem:[#allocation2 + $0xc10] sm:$0xff]  ;;  %v682_v52 = vld [vmem:[#allocation2 + $0xc78] sm:$0xff] }
  0x90   : > { %v2254_v5 = vpack.c.bf16 %v648_v63, %v644_v62  ;;  %v673_v48 = vld [vmem:[#allocation2 + $0xc30] sm:$0xff]  ;;  %v680_v50 = vld [vmem:[#allocation2 + $0xc68] sm:$0xff]  ;;  %v2370_v61 = vpack.c.bf16 %v682_v52, %v678_v51  ;;  %v286_v10 = vld [vmem:[#allocation2 + $0x20] sm:$0xff] }
  0x91   : > { %2237 = vmatpush1.bf16.msra.mxu0 %v2236_v9  ;;  %v2354_v9 = vpack.c.bf16 %v650_v2, %v646_v0  ;;  %v2270_v57 = vpack.c.bf16 %v680_v50, %v676_v49  ;;  %v677_v58 = vld [vmem:[#allocation2 + $0xc50] sm:$0xff]  ;;  %v283_v63 = vld [vmem:[#allocation2 + $0x8] sm:$0xff]  ;;  %v285_v2 = vld [vmem:[#allocation2 + $0x18] sm:$0xff] }
  0x92   : > { %2337 = vmatpush1.bf16.msra.mxu1 %v2336_v12  ;;  %2239 = vmatprep.subr.bf16.mxu0 %v2238_v13  ;;  %v656_v12 = vld [vmem:[#allocation2 + $0xba8] sm:$0xff]  ;;  %v654_v13 = vld [vmem:[#allocation2 + $0xb98] sm:$0xff]  ;;  %v3224_v59 = vld [vmem:[%s3201_s6 + $0x10] sm:$0xff] }
  0x93   : > { %2339 = vmatprep.subr.bf16.mxu1 %v2338_v18  ;;  %v2258_v18 = vpack.c.bf16 %v656_v12, %v652_v11  ;;  %v2358_v22 = vpack.c.bf16 %v658_v14, %v654_v13  ;;  %v681_v62 = vld [vmem:[#allocation2 + $0xc70] sm:$0xff]  ;;  %v287_v0 = vld [vmem:[#allocation2 + $0x28] sm:$0xff]  ;;  %v290_v23 = vld [vmem:[#allocation2 + $0x40] sm:$0xff] }
  0x94   : > { %775 = vmatmul.mubr.f32.vlgmr.msra.gmra.mrb[0].mxu0 %v694_v24  ;;  %v2372_v7 = vpack.c.bf16 %v681_v62, %v677_v58  ;;  %v2374_v8 = vpack.c.bf16 %v287_v0, %v283_v63  ;;  %v284_v11 = vld [vmem:[#allocation2 + $0x10] sm:$0xff]  ;;  %v291_v14 = vld [vmem:[#allocation2 + $0x48] sm:$0xff]  ;;  %v298_v35 = vld [vmem:[#allocation2 + $0x80] sm:$0xff] }
  0x95   : > { %2241 = vmatpush1.bf16.msra.mxu0 %v2240_v25  ;;  %917 = vmatmul.mubr.f32.vlgmr.msra.gmra.mrb[0].mxu1 %v694_v24  ;;  %v660_v24 = vld [vmem:[#allocation2 + $0xbc8] sm:$0xff]  ;;  %v288_v13 = vld [vmem:[#allocation2 + $0x30] sm:$0xff]  ;;  %v310_v49 = vld [vmem:[#allocation2 + $0xe0] sm:$0xff] }
  0x96   : > { %2341 = vmatpush1.bf16.msra.mxu1 %v2340_v26  ;;  %2243 = vmatprep.subr.bf16.mxu0 %v2242_v27  ;;  %v664_v25 = vld [vmem:[#allocation2 + $0xbe8] sm:$0xff]  ;;  %v662_v26 = vld [vmem:[#allocation2 + $0xbd8] sm:$0xff]  ;;  %v2476_v21 = vpack.c.bf16 %v288_v13, %v284_v11  ;;  %v308_v50 = vld [vmem:[#allocation2 + $0xd0] sm:$0xff] }
  0x97   : > { %2343 = vmatprep.subr.bf16.mxu1 %v2342_v31  ;;  %2156 = vmatprep.mubr.msk.f32.mxu0 %vm707_vm1, %v703_v53  ;;  %v666_v27 = vld [vmem:[#allocation2 + $0xbf8] sm:$0xff]  ;;  %v2262_v30 = vpack.c.bf16 %v664_v25, %v660_v24  ;;  %v659_v31 = vld [vmem:[#allocation2 + $0xbc0] sm:$0xff]  ;;  %v292_v25 = vld [vmem:[#allocation2 + $0x50] sm:$0xff] }
  0x98   : > { %2157 = vmatprep.mubr.msk.f32.mxu1 %vm707_vm1, %v703_v53  ;;  %v2362_v34 = vpack.c.bf16 %v666_v27, %v662_v26  ;;  %v2268_v53 = vpack.c.bf16 %v671_v45, %v667_v44  ;;  %v294_v24 = vld [vmem:[#allocation2 + $0x60] sm:$0xff]  ;;  %v296_v27 = vld [vmem:[#allocation2 + $0x70] sm:$0xff]  ;;  %v313_v44 = vld [vmem:[#allocation2 + $0xf8] sm:$0xff] }
  0x99   : > { %2245 = vmatpush1.bf16.msra.mxu0 %v2244_v37  ;;  %v672_v37 = vld [vmem:[#allocation2 + $0xc28] sm:$0xff]  ;;  %v2480_v33 = vpack.c.bf16 %v296_v27, %v292_v25  ;;  %v312_v52 = vld [vmem:[#allocation2 + $0xf0] sm:$0xff] }
  0x9a   : > { %2345 = vmatpush1.bf16.msra.mxu1 %v2344_v40  ;;  %2247 = vmatprep.subr.bf16.mxu0 %v2246_v41  ;;  %v674_v40 = vld [vmem:[#allocation2 + $0xc38] sm:$0xff]  ;;  %v2264_v41 = vpack.c.bf16 %v663_v32, %v659_v31  ;;  %v2266_v43 = vpack.c.bf16 %v672_v37, %v668_v36  ;;  %v2380_v32 = vpack.c.bf16 %v294_v24, %v290_v23  ;;  %v302_v36 = vld [vmem:[#allocation2 + $0xa0] sm:$0xff]  ;;  %v300_v37 = vld [vmem:[#allocation2 + $0x90] sm:$0xff] }
  0x9b   : > { %2347 = vmatprep.subr.bf16.mxu1 %v2346_v47  ;;  %v2366_v47 = vpack.c.bf16 %v674_v40, %v670_v39  ;;  %v305_v31 = vld [vmem:[#allocation2 + $0xb8] sm:$0xff]  ;;  %v304_v40 = vld [vmem:[#allocation2 + $0xb0] sm:$0xff]  ;;  %v2384_v45 = vpack.c.bf16 %v302_v36, %v298_v35  ;;  %v334_v23 = vld [vmem:[#allocation2 + $0x1a0] sm:$0xff] }
  0x9c   : > { %v316_v62 = vld [vmem:[#allocation2 + $0x110] sm:$0xff]  ;;  %v339_v27 = vld [vmem:[#allocation2 + $0x1c8] sm:$0xff]  ;;  %v342_v35 = vld [vmem:[#allocation2 + $0x1e0] sm:$0xff] }
  0x9d   : > { %2249 = vmatpush1.bf16.msra.mxu0 %v2248_v54  ;;  %v675_v54 = vld [vmem:[#allocation2 + $0xc40] sm:$0xff]  ;;  %v320_v0 = vld [vmem:[#allocation2 + $0x130] sm:$0xff] }
  0x9e   : > { %2349 = vmatpush1.bf16.msra.mxu1 %v2348_v55  ;;  %2251 = vmatprep.subr.bf16.mxu0 %v2250_v56  ;;  %v679_v55 = vld [vmem:[#allocation2 + $0xc60] sm:$0xff]  ;;  %v2368_v56 = vpack.c.bf16 %v673_v48, %v669_v46  ;;  %v2484_v46 = vpack.c.bf16 %v304_v40, %v300_v37  ;;  %v324_v11 = vld [vmem:[#allocation2 + $0x150] sm:$0xff]  ;;  %v347_v40 = vld [vmem:[#allocation2 + $0x208] sm:$0xff] }
  0x9f   : > { %2351 = vmatprep.subr.bf16.mxu1 %v2350_v60  ;;  %v280_v60 = vld [vmem:[%s3201_s6 + $0x30] sm:$0x3]  ;;  %v306_v48 = vld [vmem:[#allocation2 + $0xc0] sm:$0xff] }
  0xa0   : > { %v699_v6 = vrot.slane %v280_v60, 1  ;;  %v314_v60 = vld [vmem:[#allocation2 + $0x100] sm:$0xff]  ;;  %v328_v13 = vld [vmem:[#allocation2 + $0x170] sm:$0xff] }
  0xa1   : > { %2253 = vmatpush1.bf16.msra.mxu0 %v2252_v3  ;;  %v289_v3 = vld [vmem:[#allocation2 + $0x38] sm:$0xff]  ;;  %v332_v24 = vld [vmem:[#allocation2 + $0x190] sm:$0xff] }
  0xa2   : > { %2353 = vmatpush1.bf16.msra.mxu1 %v2352_v4  ;;  %2255 = vmatprep.subr.bf16.mxu0 %v2254_v5  ;;  %v2272_v4 = vpack.c.bf16 %v679_v55, %v675_v54  ;;  %v698_v5 = vrot.slane %v3224_v59, 1  ;;  %v2474_v12 = vpack.c.bf16 %v289_v3, %v285_v2  ;;  %v319_v54 = vld [vmem:[#allocation2 + $0x128] sm:$0xff]  ;;  %v317_v55 = vld [vmem:[#allocation2 + $0x118] sm:$0xff]  ;;  %v340_v36 = vld [vmem:[#allocation2 + $0x1d0] sm:$0xff] }
  0xa3   : > { %2355 = vmatprep.subr.bf16.mxu1 %v2354_v9  ;;  %v282_v9 = vld [vmem:[#allocation2] sm:$0xff]  ;;  %v323_v2 = vld [vmem:[#allocation2 + $0x148] sm:$0xff] }
  0xa4   : > { %v700_v19 = vsel %vm691_vm0, %v698_v5, %v699_v6  ;;  %v2376_v20 = vpack.c.bf16 %v286_v10, %v282_v9  ;;  %v327_v3 = vld [vmem:[#allocation2 + $0x168] sm:$0xff]  ;;  %v329_v5 = vld [vmem:[#allocation2 + $0x178] sm:$0xff]  ;;  %v322_v9 = vld [vmem:[#allocation2 + $0x140] sm:$0xff] }
  0xa5   : > { %2257 = vmatpush1.bf16.msra.mxu0 %v2256_v15  ;;  %v295_v15 = vld [vmem:[#allocation2 + $0x68] sm:$0xff]  ;;  %v326_v10 = vld [vmem:[#allocation2 + $0x160] sm:$0xff] }
  0xa6   : > { %2357 = vmatpush1.bf16.msra.mxu1 %v2356_v17  ;;  %2259 = vmatprep.subr.bf16.mxu0 %v2258_v18  ;;  %v293_v17 = vld [vmem:[#allocation2 + $0x58] sm:$0xff] }
  0xa7   : > { %2359 = vmatprep.subr.bf16.mxu1 %v2358_v22  ;;  %v297_v18 = vld [vmem:[#allocation2 + $0x78] sm:$0xff]  ;;  %v2378_v22 = vpack.c.bf16 %v295_v15, %v291_v14  ;;  %v331_v14 = vld [vmem:[#allocation2 + $0x188] sm:$0xff] }
  0xa8   : > { %v2478_v26 = vpack.c.bf16 %v297_v18, %v293_v17  ;;  %v335_v15 = vld [vmem:[#allocation2 + $0x1a8] sm:$0xff]  ;;  %v333_v17 = vld [vmem:[#allocation2 + $0x198] sm:$0xff] }
  0xa9   : > { %2261 = vmatpush1.bf16.msra.mxu0 %v2260_v28  ;;  %v299_v28 = vld [vmem:[#allocation2 + $0x88] sm:$0xff]  ;;  %v337_v18 = vld [vmem:[#allocation2 + $0x1b8] sm:$0xff] }
  0xaa   : > { %2361 = vmatpush1.bf16.msra.mxu1 %v2360_v29  ;;  %2263 = vmatprep.subr.bf16.mxu0 %v2262_v30  ;;  %v303_v29 = vld [vmem:[#allocation2 + $0xa8] sm:$0xff]  ;;  %v301_v30 = vld [vmem:[#allocation2 + $0x98] sm:$0xff]  ;;  %v2498_v25 = vpack.c.bf16 %v337_v18, %v333_v17 }
  0xab   : > { %2363 = vmatprep.subr.bf16.mxu1 %v2362_v34  ;;  %v2382_v34 = vpack.c.bf16 %v303_v29, %v299_v28  ;;  %v2482_v39 = vpack.c.bf16 %v305_v31, %v301_v30  ;;  %v343_v28 = vld [vmem:[#allocation2 + $0x1e8] sm:$0xff]  ;;  %v341_v29 = vld [vmem:[#allocation2 + $0x1d8] sm:$0xff] }
  0xac   : > { %v345_v30 = vld [vmem:[#allocation2 + $0x1f8] sm:$0xff] }
  0xad   : > { %2265 = vmatpush1.bf16.msra.mxu0 %v2264_v41  ;;  %v307_v41 = vld [vmem:[#allocation2 + $0xc8] sm:$0xff]  ;;  %v2502_v37 = vpack.c.bf16 %v345_v30, %v341_v29  ;;  %v377_v17 = vld [vmem:[#allocation2 + $0x2f8] sm:$0xff] }
  0xae   : > { %2365 = vmatpush1.bf16.msra.mxu1 %v2364_v42  ;;  %2267 = vmatprep.subr.bf16.mxu0 %v2266_v43  ;;  %v311_v42 = vld [vmem:[#allocation2 + $0xe8] sm:$0xff]  ;;  %v309_v43 = vld [vmem:[#allocation2 + $0xd8] sm:$0xff] }
  0xaf   : > { %2367 = vmatprep.subr.bf16.mxu1 %v2366_v47  ;;  %v2386_v47 = vpack.c.bf16 %v311_v42, %v307_v41  ;;  %v2486_v51 = vpack.c.bf16 %v313_v44, %v309_v43  ;;  %v351_v41 = vld [vmem:[#allocation2 + $0x228] sm:$0xff]  ;;  %v349_v42 = vld [vmem:[#allocation2 + $0x218] sm:$0xff] }
  0xb0   : > { %v353_v43 = vld [vmem:[#allocation2 + $0x238] sm:$0xff] }
  0xb1   : > { %2269 = vmatpush1.bf16.msra.mxu0 %v2268_v53  ;;  %v315_v53 = vld [vmem:[#allocation2 + $0x108] sm:$0xff]  ;;  %v385_v29 = vld [vmem:[#allocation2 + $0x338] sm:$0xff] }
  0xb2   : > { %2369 = vmatpush1.bf16.msra.mxu1 %v2368_v56  ;;  %2271 = vmatprep.subr.bf16.mxu0 %v2270_v57  ;;  %v321_v56 = vld [vmem:[#allocation2 + $0x138] sm:$0xff]  ;;  %v2388_v57 = vpack.c.bf16 %v310_v49, %v306_v48  ;;  %v2390_v58 = vpack.c.bf16 %v319_v54, %v315_v53  ;;  %v350_v48 = vld [vmem:[#allocation2 + $0x220] sm:$0xff]  ;;  %v348_v49 = vld [vmem:[#allocation2 + $0x210] sm:$0xff] }
  0xb3   : > { %2371 = vmatprep.subr.bf16.mxu1 %v2370_v61  ;;  %v318_v61 = vld [vmem:[#allocation2 + $0x120] sm:$0xff]  ;;  %v2490_v63 = vpack.c.bf16 %v321_v56, %v317_v55  ;;  %v359_v53 = vld [vmem:[#allocation2 + $0x268] sm:$0xff]  ;;  %v357_v54 = vld [vmem:[#allocation2 + $0x258] sm:$0xff] }
  0xb4   : > { %v2392_v6 = vpack.c.bf16 %v318_v61, %v314_v60  ;;  %v361_v55 = vld [vmem:[#allocation2 + $0x278] sm:$0xff]  ;;  %v358_v60 = vld [vmem:[#allocation2 + $0x260] sm:$0xff]  ;;  %v356_v61 = vld [vmem:[#allocation2 + $0x250] sm:$0xff] }
  0xb5   : > { %2273 = vmatpush1.bf16.msra.mxu0 %v2272_v4  ;;  %v325_v4 = vld [vmem:[#allocation2 + $0x158] sm:$0xff] }
  0xb6   : > { %2373 = vmatpush1.bf16.msra.mxu1 %v2372_v7  ;;  %2375 = vmatprep.subr.bf16.mxu0 %v2374_v8  ;;  %v2492_v7 = vpack.c.bf16 %v320_v0, %v316_v62  ;;  %v2394_v8 = vpack.c.bf16 %v327_v3, %v323_v2  ;;  %v2510_v62 = vpack.c.bf16 %v361_v55, %v357_v54  ;;  %v363_v0 = vld [vmem:[#allocation2 + $0x288] sm:$0xff]  ;;  %v365_v3 = vld [vmem:[#allocation2 + $0x298] sm:$0xff] }
  0xb7   : > { %2475 = vmatprep.subr.bf16.mxu1 %v2474_v12  ;;  %v2494_v12 = vpack.c.bf16 %v329_v5, %v325_v4  ;;  %v367_v2 = vld [vmem:[#allocation2 + $0x2a8] sm:$0xff]  ;;  %v369_v4 = vld [vmem:[#allocation2 + $0x2b8] sm:$0xff] }
  0xb8   : > { %846 = vmatmul.mubr.f32.vlgmr.msra.gmra.mrb[0].mxu0 %v700_v19  ;;  %v401_v54 = vld [vmem:[#allocation2 + $0x3b8] sm:$0xff] }
  0xb9   : > { %988 = vmatmul.mubr.f32.vlgmr.msra.gmra.mrb[0].mxu1 %v700_v19  ;;  %2377 = vmatpush1.bf16.msra.mxu0 %v2376_v20  ;;  %v2396_v19 = vpack.c.bf16 %v326_v10, %v322_v9  ;;  %v2496_v20 = vpack.c.bf16 %v328_v13, %v324_v11  ;;  %v366_v9 = vld [vmem:[#allocation2 + $0x2a0] sm:$0xff]  ;;  %v364_v10 = vld [vmem:[#allocation2 + $0x290] sm:$0xff]  ;;  %v2514_v11 = vpack.c.bf16 %v369_v4, %v365_v3  ;;  %v371_v13 = vld [vmem:[#allocation2 + $0x2c8] sm:$0xff] }
  0xba   : > { %2477 = vmatpush1.bf16.msra.mxu1 %v2476_v21  ;;  %2379 = vmatprep.subr.bf16.mxu0 %v2378_v22  ;;  %v2398_v21 = vpack.c.bf16 %v335_v15, %v331_v14  ;;  %v330_v22 = vld [vmem:[#allocation2 + $0x180] sm:$0xff]  ;;  %v375_v14 = vld [vmem:[#allocation2 + $0x2e8] sm:$0xff]  ;;  %v373_v15 = vld [vmem:[#allocation2 + $0x2d8] sm:$0xff] }
  0xbb   : > { %2479 = vmatprep.subr.bf16.mxu1 %v2478_v26  ;;  %1060 = vmatprep.mubr.f32.mxu0 %v3204_v16  ;;  %v336_v26 = vld [vmem:[#allocation2 + $0x1b0] sm:$0xff]  ;;  %v2400_v31 = vpack.c.bf16 %v334_v23, %v330_v22  ;;  %v374_v22 = vld [vmem:[#allocation2 + $0x2e0] sm:$0xff]  ;;  %v409_v3 = vld [vmem:[#allocation2 + $0x3f8] sm:$0xff] }
  0xbc   : > { %1202 = vmatprep.mubr.f32.mxu1 %v3204_v16  ;;  %v2488_v16 = vpack.c.bf16 %v312_v52, %v308_v50  ;;  %v2506_v50 = vpack.c.bf16 %v353_v43, %v349_v42  ;;  %v355_v52 = vld [vmem:[#allocation2 + $0x248] sm:$0xff]  ;;  %v372_v23 = vld [vmem:[#allocation2 + $0x2d0] sm:$0xff]  ;;  %v393_v42 = vld [vmem:[#allocation2 + $0x378] sm:$0xff] }
  0xbd   : > { %2381 = vmatpush1.bf16.msra.mxu0 %v2380_v32  ;;  %v2500_v32 = vpack.c.bf16 %v336_v26, %v332_v24  ;;  %v2518_v24 = vpack.c.bf16 %v377_v17, %v373_v15  ;;  %v379_v26 = vld [vmem:[#allocation2 + $0x308] sm:$0xff]  ;;  %v417_v15 = vld [vmem:[#allocation2 + $0x438] sm:$0xff] }
  0xbe   : > { %2481 = vmatpush1.bf16.msra.mxu1 %v2480_v33  ;;  %2383 = vmatprep.subr.bf16.mxu0 %v2382_v34  ;;  %v2402_v33 = vpack.c.bf16 %v343_v28, %v339_v27  ;;  %v338_v34 = vld [vmem:[#allocation2 + $0x1c0] sm:$0xff]  ;;  %v383_v27 = vld [vmem:[#allocation2 + $0x328] sm:$0xff]  ;;  %v381_v28 = vld [vmem:[#allocation2 + $0x318] sm:$0xff] }
  0xbf   : > { %2483 = vmatprep.subr.bf16.mxu1 %v2482_v39  ;;  %v344_v39 = vld [vmem:[#allocation2 + $0x1f0] sm:$0xff]  ;;  %v2404_v44 = vpack.c.bf16 %v342_v35, %v338_v34  ;;  %v382_v34 = vld [vmem:[#allocation2 + $0x320] sm:$0xff] }
  0xc0   : > { %v380_v35 = vld [vmem:[#allocation2 + $0x310] sm:$0xff] }
  0xc1   : > { %2385 = vmatpush1.bf16.msra.mxu0 %v2384_v45  ;;  %v2504_v45 = vpack.c.bf16 %v344_v39, %v340_v36  ;;  %v2522_v36 = vpack.c.bf16 %v385_v29, %v381_v28  ;;  %v387_v39 = vld [vmem:[#allocation2 + $0x348] sm:$0xff]  ;;  %v425_v28 = vld [vmem:[#allocation2 + $0x478] sm:$0xff] }
  0xc2   : > { %2485 = vmatpush1.bf16.msra.mxu1 %v2484_v46  ;;  %2387 = vmatprep.subr.bf16.mxu0 %v2386_v47  ;;  %v2406_v46 = vpack.c.bf16 %v351_v41, %v347_v40  ;;  %v346_v47 = vld [vmem:[#allocation2 + $0x200] sm:$0xff]  ;;  %v391_v40 = vld [vmem:[#allocation2 + $0x368] sm:$0xff]  ;;  %v389_v41 = vld [vmem:[#allocation2 + $0x358] sm:$0xff] }
  0xc3   : > { %2487 = vmatprep.subr.bf16.mxu1 %v2486_v51  ;;  %v352_v51 = vld [vmem:[#allocation2 + $0x230] sm:$0xff]  ;;  %v2408_v56 = vpack.c.bf16 %v350_v48, %v346_v47  ;;  %v390_v47 = vld [vmem:[#allocation2 + $0x360] sm:$0xff] }
  0xc4   : > { %v388_v48 = vld [vmem:[#allocation2 + $0x350] sm:$0xff] }
  0xc5   : > { %2389 = vmatpush1.bf16.msra.mxu0 %v2388_v57  ;;  %v2508_v57 = vpack.c.bf16 %v352_v51, %v348_v49  ;;  %v2526_v49 = vpack.c.bf16 %v393_v42, %v389_v41  ;;  %v395_v51 = vld [vmem:[#allocation2 + $0x388] sm:$0xff]  ;;  %v433_v41 = vld [vmem:[#allocation2 + $0x4b8] sm:$0xff] }
  0xc6   : > { %2489 = vmatpush1.bf16.msra.mxu1 %v2488_v16  ;;  %2391 = vmatprep.subr.bf16.mxu0 %v2390_v58  ;;  %v2410_v16 = vpack.c.bf16 %v359_v53, %v355_v52  ;;  %v354_v58 = vld [vmem:[#allocation2 + $0x240] sm:$0xff]  ;;  %v399_v52 = vld [vmem:[#allocation2 + $0x3a8] sm:$0xff]  ;;  %v397_v53 = vld [vmem:[#allocation2 + $0x398] sm:$0xff] }
  0xc7   : > { %2491 = vmatprep.subr.bf16.mxu1 %v2490_v63  ;;  %v360_v63 = vld [vmem:[#allocation2 + $0x270] sm:$0xff]  ;;  %v2412_v5 = vpack.c.bf16 %v358_v60, %v354_v58  ;;  %v398_v58 = vld [vmem:[#allocation2 + $0x3a0] sm:$0xff] }
  0xc8   : > { %v396_v60 = vld [vmem:[#allocation2 + $0x390] sm:$0xff] }
  0xc9   : > { %2393 = vmatpush1.bf16.msra.mxu0 %v2392_v6  ;;  %v2512_v6 = vpack.c.bf16 %v360_v63, %v356_v61  ;;  %v2530_v61 = vpack.c.bf16 %v401_v54, %v397_v53  ;;  %v403_v63 = vld [vmem:[#allocation2 + $0x3c8] sm:$0xff]  ;;  %v441_v53 = vld [vmem:[#allocation2 + $0x4f8] sm:$0xff] }
  0xca   : > { %2493 = vmatpush1.bf16.msra.mxu1 %v2492_v7  ;;  %2395 = vmatprep.subr.bf16.mxu0 %v2394_v8  ;;  %v2414_v7 = vpack.c.bf16 %v367_v2, %v363_v0  ;;  %v362_v8 = vld [vmem:[#allocation2 + $0x280] sm:$0xff]  ;;  %v407_v0 = vld [vmem:[#allocation2 + $0x3e8] sm:$0xff]  ;;  %v405_v2 = vld [vmem:[#allocation2 + $0x3d8] sm:$0xff] }
  0xcb   : > { %2495 = vmatprep.subr.bf16.mxu1 %v2494_v12  ;;  %v368_v12 = vld [vmem:[#allocation2 + $0x2b0] sm:$0xff]  ;;  %v2416_v18 = vpack.c.bf16 %v366_v9, %v362_v8  ;;  %v406_v8 = vld [vmem:[#allocation2 + $0x3e0] sm:$0xff] }
  0xcc   : > { %v404_v9 = vld [vmem:[#allocation2 + $0x3d0] sm:$0xff] }
  0xcd   : > { %2397 = vmatpush1.bf16.msra.mxu0 %v2396_v19  ;;  %v2516_v19 = vpack.c.bf16 %v368_v12, %v364_v10  ;;  %v2534_v10 = vpack.c.bf16 %v409_v3, %v405_v2  ;;  %v411_v12 = vld [vmem:[#allocation2 + $0x408] sm:$0xff] }
  0xce   : > { %2497 = vmatpush1.bf16.msra.mxu1 %v2496_v20  ;;  %2399 = vmatprep.subr.bf16.mxu0 %v2398_v21  ;;  %v2418_v20 = vpack.c.bf16 %v375_v14, %v371_v13  ;;  %v370_v21 = vld [vmem:[#allocation2 + $0x2c0] sm:$0xff]  ;;  %v415_v13 = vld [vmem:[#allocation2 + $0x428] sm:$0xff]  ;;  %v413_v14 = vld [vmem:[#allocation2 + $0x418] sm:$0xff] }
  0xcf   : > { %2499 = vmatprep.subr.bf16.mxu1 %v2498_v25  ;;  %v376_v25 = vld [vmem:[#allocation2 + $0x2f0] sm:$0xff]  ;;  %v2420_v30 = vpack.c.bf16 %v374_v22, %v370_v21  ;;  %v414_v21 = vld [vmem:[#allocation2 + $0x420] sm:$0xff] }
  0xd0   : > { %v412_v22 = vld [vmem:[#allocation2 + $0x410] sm:$0xff] }
  0xd1   : > { %2401 = vmatpush1.bf16.msra.mxu0 %v2400_v31  ;;  %v2520_v31 = vpack.c.bf16 %v376_v25, %v372_v23  ;;  %v2538_v23 = vpack.c.bf16 %v417_v15, %v413_v14  ;;  %v419_v25 = vld [vmem:[#allocation2 + $0x448] sm:$0xff] }
  0xd2   : > { %2501 = vmatpush1.bf16.msra.mxu1 %v2500_v32  ;;  %2403 = vmatprep.subr.bf16.mxu0 %v2402_v33  ;;  %v2422_v32 = vpack.c.bf16 %v383_v27, %v379_v26  ;;  %v378_v33 = vld [vmem:[#allocation2 + $0x300] sm:$0xff]  ;;  %v423_v26 = vld [vmem:[#allocation2 + $0x468] sm:$0xff]  ;;  %v421_v27 = vld [vmem:[#allocation2 + $0x458] sm:$0xff] }
  0xd3   : > { %2503 = vmatprep.subr.bf16.mxu1 %v2502_v37  ;;  %v384_v37 = vld [vmem:[#allocation2 + $0x330] sm:$0xff]  ;;  %v2424_v43 = vpack.c.bf16 %v382_v34, %v378_v33  ;;  %v422_v33 = vld [vmem:[#allocation2 + $0x460] sm:$0xff] }
  0xd4   : > { %v420_v34 = vld [vmem:[#allocation2 + $0x450] sm:$0xff] }
  0xd5   : > { %2405 = vmatpush1.bf16.msra.mxu0 %v2404_v44  ;;  %v2524_v44 = vpack.c.bf16 %v384_v37, %v380_v35  ;;  %v2542_v35 = vpack.c.bf16 %v425_v28, %v421_v27  ;;  %v427_v37 = vld [vmem:[#allocation2 + $0x488] sm:$0xff] }
  0xd6   : > { %2505 = vmatpush1.bf16.msra.mxu1 %v2504_v45  ;;  %2407 = vmatprep.subr.bf16.mxu0 %v2406_v46  ;;  %v2426_v45 = vpack.c.bf16 %v391_v40, %v387_v39  ;;  %v386_v46 = vld [vmem:[#allocation2 + $0x340] sm:$0xff]  ;;  %v431_v39 = vld [vmem:[#allocation2 + $0x4a8] sm:$0xff]  ;;  %v429_v40 = vld [vmem:[#allocation2 + $0x498] sm:$0xff] }
  0xd7   : > { %2507 = vmatprep.subr.bf16.mxu1 %v2506_v50  ;;  %v392_v50 = vld [vmem:[#allocation2 + $0x370] sm:$0xff]  ;;  %v2428_v55 = vpack.c.bf16 %v390_v47, %v386_v46  ;;  %v430_v46 = vld [vmem:[#allocation2 + $0x4a0] sm:$0xff] }
  0xd8   : > { %v428_v47 = vld [vmem:[#allocation2 + $0x490] sm:$0xff] }
  0xd9   : > { %2409 = vmatpush1.bf16.msra.mxu0 %v2408_v56  ;;  %v2528_v56 = vpack.c.bf16 %v392_v50, %v388_v48  ;;  %v2546_v48 = vpack.c.bf16 %v433_v41, %v429_v40  ;;  %v435_v50 = vld [vmem:[#allocation2 + $0x4c8] sm:$0xff] }
  0xda   : > { %2509 = vmatpush1.bf16.msra.mxu1 %v2508_v57  ;;  %2411 = vmatprep.subr.bf16.mxu0 %v2410_v16  ;;  %v2430_v57 = vpack.c.bf16 %v399_v52, %v395_v51  ;;  %v394_v16 = vld [vmem:[#allocation2 + $0x380] sm:$0xff]  ;;  %v439_v51 = vld [vmem:[#allocation2 + $0x4e8] sm:$0xff]  ;;  %v437_v52 = vld [vmem:[#allocation2 + $0x4d8] sm:$0xff] }
  0xdb   : > { %2511 = vmatprep.subr.bf16.mxu1 %v2510_v62  ;;  %v400_v62 = vld [vmem:[#allocation2 + $0x3b0] sm:$0xff]  ;;  %v2432_v4 = vpack.c.bf16 %v398_v58, %v394_v16  ;;  %v2550_v58 = vpack.c.bf16 %v441_v53, %v437_v52 }
  0xdc   : > { %v436_v16 = vld [vmem:[#allocation2 + $0x4d0] sm:$0xff] }
  0xdd   : > { %2413 = vmatpush1.bf16.msra.mxu0 %v2412_v5  ;;  %v2532_v5 = vpack.c.bf16 %v400_v62, %v396_v60  ;;  %v440_v60 = vld [vmem:[#allocation2 + $0x4f0] sm:$0xff]  ;;  %v447_v62 = vld [vmem:[#allocation2 + $0x528] sm:$0xff] }
  0xde   : > { %2513 = vmatpush1.bf16.msra.mxu1 %v2512_v6  ;;  %2415 = vmatprep.subr.bf16.mxu0 %v2414_v7  ;;  %v2434_v6 = vpack.c.bf16 %v407_v0, %v403_v63  ;;  %v402_v7 = vld [vmem:[#allocation2 + $0x3c0] sm:$0xff]  ;;  %v445_v63 = vld [vmem:[#allocation2 + $0x518] sm:$0xff] }
  0xdf   : > { %2515 = vmatprep.subr.bf16.mxu1 %v2514_v11  ;;  %v408_v11 = vld [vmem:[#allocation2 + $0x3f0] sm:$0xff]  ;;  %v2436_v17 = vpack.c.bf16 %v406_v8, %v402_v7  ;;  %v449_v0 = vld [vmem:[#allocation2 + $0x538] sm:$0xff] }
  0xe0   : > { %v2554_v7 = vpack.c.bf16 %v449_v0, %v445_v63  ;;  %v448_v8 = vld [vmem:[#allocation2 + $0x530] sm:$0xff] }
  0xe1   : > { %2417 = vmatpush1.bf16.msra.mxu0 %v2416_v18  ;;  %v2536_v18 = vpack.c.bf16 %v408_v11, %v404_v9  ;;  %v451_v9 = vld [vmem:[#allocation2 + $0x548] sm:$0xff]  ;;  %v453_v11 = vld [vmem:[#allocation2 + $0x558] sm:$0xff] }
  0xe2   : > { %2517 = vmatpush1.bf16.msra.mxu1 %v2516_v19  ;;  %2419 = vmatprep.subr.bf16.mxu0 %v2418_v20  ;;  %v2438_v19 = vpack.c.bf16 %v415_v13, %v411_v12  ;;  %v410_v20 = vld [vmem:[#allocation2 + $0x400] sm:$0xff]  ;;  %v457_v12 = vld [vmem:[#allocation2 + $0x578] sm:$0xff] }
  0xe3   : > { %2519 = vmatprep.subr.bf16.mxu1 %v2518_v24  ;;  %v416_v24 = vld [vmem:[#allocation2 + $0x430] sm:$0xff]  ;;  %v2440_v29 = vpack.c.bf16 %v414_v21, %v410_v20  ;;  %v2558_v20 = vpack.c.bf16 %v457_v12, %v453_v11  ;;  %v2864_v12 = vld [vmem:[%s3201_s6 + $0x28] sm:$0x3] }
  0xe4   : > { %v456_v21 = vld [vmem:[#allocation2 + $0x570] sm:$0xff] }
  0xe5   : > { %2421 = vmatpush1.bf16.msra.mxu0 %v2420_v30  ;;  %v2540_v30 = vpack.c.bf16 %v416_v24, %v412_v22  ;;  %v459_v22 = vld [vmem:[#allocation2 + $0x588] sm:$0xff]  ;;  %v461_v24 = vld [vmem:[#allocation2 + $0x598] sm:$0xff] }
  0xe6   : > { %2521 = vmatpush1.bf16.msra.mxu1 %v2520_v31  ;;  %2423 = vmatprep.subr.bf16.mxu0 %v2422_v32  ;;  %v2442_v31 = vpack.c.bf16 %v423_v26, %v419_v25  ;;  %v418_v32 = vld [vmem:[#allocation2 + $0x440] sm:$0xff]  ;;  %v465_v25 = vld [vmem:[#allocation2 + $0x5b8] sm:$0xff] }
  0xe7   : > { %2523 = vmatprep.subr.bf16.mxu1 %v2522_v36  ;;  %v424_v36 = vld [vmem:[#allocation2 + $0x470] sm:$0xff]  ;;  %v2444_v42 = vpack.c.bf16 %v422_v33, %v418_v32  ;;  %v2562_v32 = vpack.c.bf16 %v465_v25, %v461_v24  ;;  %v1302_v24 = vld [vmem:[#allocation2 + $0xd28] sm:$0xff]  ;;  %v1300_v25 = vld [vmem:[#allocation2 + $0xd18] sm:$0xff] }
  0xe8   : > { %v464_v33 = vld [vmem:[#allocation2 + $0x5b0] sm:$0xff] }
  0xe9   : > { %2425 = vmatpush1.bf16.msra.mxu0 %v2424_v43  ;;  %v2544_v43 = vpack.c.bf16 %v424_v36, %v420_v34  ;;  %v467_v34 = vld [vmem:[#allocation2 + $0x5c8] sm:$0xff]  ;;  %v469_v36 = vld [vmem:[#allocation2 + $0x5d8] sm:$0xff] }
  0xea   : > { %2525 = vmatpush1.bf16.msra.mxu1 %v2524_v44  ;;  %2427 = vmatprep.subr.bf16.mxu0 %v2426_v45  ;;  %v2446_v44 = vpack.c.bf16 %v431_v39, %v427_v37  ;;  %v426_v45 = vld [vmem:[#allocation2 + $0x480] sm:$0xff]  ;;  %v473_v37 = vld [vmem:[#allocation2 + $0x5f8] sm:$0xff] }
  0xeb   : > { %2527 = vmatprep.subr.bf16.mxu1 %v2526_v49  ;;  %v432_v49 = vld [vmem:[#allocation2 + $0x4b0] sm:$0xff] }
  0xec   : > { %v2548_v54 = vpack.c.bf16 %v432_v49, %v428_v47  ;;  %v475_v47 = vld [vmem:[#allocation2 + $0x608] sm:$0xff]  ;;  %v477_v49 = vld [vmem:[#allocation2 + $0x618] sm:$0xff] }
  0xed   : > { %2429 = vmatpush1.bf16.msra.mxu0 %v2428_v55  ;;  %v2450_v55 = vpack.c.bf16 %v439_v51, %v435_v50  ;;  %v481_v50 = vld [vmem:[#allocation2 + $0x638] sm:$0xff] }
  0xee   : > { %2529 = vmatpush1.bf16.msra.mxu1 %v2528_v56  ;;  %2431 = vmatprep.subr.bf16.mxu0 %v2430_v57  ;;  %v434_v56 = vld [vmem:[#allocation2 + $0x4c0] sm:$0xff] }
  0xef   : > { %2531 = vmatprep.subr.bf16.mxu1 %v2530_v61  ;;  %v438_v57 = vld [vmem:[#allocation2 + $0x4e0] sm:$0xff]  ;;  %v443_v61 = vld [vmem:[#allocation2 + $0x508] sm:$0xff] }
  0xf0   : > { %v2452_v2 = vpack.c.bf16 %v438_v57, %v434_v56  ;;  %v2454_v3 = vpack.c.bf16 %v447_v62, %v443_v61  ;;  %v2570_v56 = vpack.c.bf16 %v481_v50, %v477_v49  ;;  %v480_v57 = vld [vmem:[#allocation2 + $0x630] sm:$0xff]  ;;  %v1288_v61 = vld [vmem:[#allocation2 + $0xcb8] sm:$0xff]  ;;  %v1318_v49 = vld [vmem:[#allocation2 + $0xda8] sm:$0xff] }
  0xf1   : > { %2433 = vmatpush1.bf16.msra.mxu0 %v2432_v4  ;;  %v442_v4 = vld [vmem:[#allocation2 + $0x500] sm:$0xff]  ;;  %v1316_v50 = vld [vmem:[#allocation2 + $0xd98] sm:$0xff] }
  0xf2   : > { %2533 = vmatpush1.bf16.msra.mxu1 %v2532_v5  ;;  %2435 = vmatprep.subr.bf16.mxu0 %v2434_v6  ;;  %v446_v5 = vld [vmem:[#allocation2 + $0x520] sm:$0xff]  ;;  %v444_v6 = vld [vmem:[#allocation2 + $0x510] sm:$0xff] }
  0xf3   : > { %2535 = vmatprep.subr.bf16.mxu1 %v2534_v10  ;;  %v455_v10 = vld [vmem:[#allocation2 + $0x568] sm:$0xff]  ;;  %v2456_v13 = vpack.c.bf16 %v446_v5, %v442_v4  ;;  %v2556_v14 = vpack.c.bf16 %v448_v8, %v444_v6  ;;  %v1287_v5 = vld [vmem:[#allocation2 + $0xcb0] sm:$0xff]  ;;  %v1292_v8 = vld [vmem:[#allocation2 + $0xcd8] sm:$0xff] }
  0xf4   : > { %v2458_v15 = vpack.c.bf16 %v455_v10, %v451_v9  ;;  %v1290_v6 = vld [vmem:[#allocation2 + $0xcc8] sm:$0xff]  ;;  %v1296_v9 = vld [vmem:[#allocation2 + $0xcf8] sm:$0xff] }
  0xf5   : > { %2437 = vmatpush1.bf16.msra.mxu0 %v2436_v17  ;;  %v450_v17 = vld [vmem:[#allocation2 + $0x540] sm:$0xff]  ;;  %v2863_v10 = vld [vmem:[%s3201_s6 + $0x8] sm:$0xff] }
  0xf6   : > { %2537 = vmatpush1.bf16.msra.mxu1 %v2536_v18  ;;  %2439 = vmatprep.subr.bf16.mxu0 %v2438_v19  ;;  %v454_v18 = vld [vmem:[#allocation2 + $0x560] sm:$0xff]  ;;  %v452_v19 = vld [vmem:[#allocation2 + $0x550] sm:$0xff]  ;;  %v1485_v11 = vrot.slane %v2863_v10, 2  ;;  %v1336_v10 = vld [vmem:[#allocation2 + $0xe38] sm:$0xff] }
  0xf7   : > { %2539 = vmatprep.subr.bf16.mxu1 %v2538_v23  ;;  %v463_v23 = vld [vmem:[#allocation2 + $0x5a8] sm:$0xff]  ;;  %v2460_v26 = vpack.c.bf16 %v454_v18, %v450_v17  ;;  %v2560_v27 = vpack.c.bf16 %v456_v21, %v452_v19  ;;  %v1289_v18 = vld [vmem:[#allocation2 + $0xcc0] sm:$0xff]  ;;  %v2678_v21 = vpack.c.bf16 %v1296_v9, %v1292_v8  ;;  %v1332_v9 = vld [vmem:[#allocation2 + $0xe18] sm:$0xff] }
  0xf8   : > { %1061 = vmatmul.mubr.f32.vlgmr.msra.gmra.mrb[0].mxu0 %v3210_v1  ;;  %v2462_v28 = vpack.c.bf16 %v463_v23, %v459_v22  ;;  %v1293_v19 = vld [vmem:[#allocation2 + $0xce0] sm:$0xff]  ;;  %v1295_v22 = vld [vmem:[#allocation2 + $0xcf0] sm:$0xff]  ;;  %v1298_v23 = vld [vmem:[#allocation2 + $0xd08] sm:$0xff] }
  0xf9   : > { %2441 = vmatpush1.bf16.msra.mxu0 %v2440_v29  ;;  %1203 = vmatmul.mubr.f32.vlgmr.msra.gmra.mrb[0].mxu1 %v3210_v1  ;;  %v2448_v1 = vpack.c.bf16 %v430_v46, %v426_v45  ;;  %v458_v29 = vld [vmem:[#allocation2 + $0x580] sm:$0xff]  ;;  %v2566_v45 = vpack.c.bf16 %v473_v37, %v469_v36  ;;  %v472_v46 = vld [vmem:[#allocation2 + $0x5f0] sm:$0xff]  ;;  %v1306_v36 = vld [vmem:[#allocation2 + $0xd48] sm:$0xff] }
  0xfa   : > { %2541 = vmatpush1.bf16.msra.mxu1 %v2540_v30  ;;  %2443 = vmatprep.subr.bf16.mxu0 %v2442_v31  ;;  %v462_v30 = vld [vmem:[#allocation2 + $0x5a0] sm:$0xff]  ;;  %v460_v31 = vld [vmem:[#allocation2 + $0x590] sm:$0xff]  ;;  %v1310_v37 = vld [vmem:[#allocation2 + $0xd68] sm:$0xff] }
  0xfb   : > { %2543 = vmatprep.subr.bf16.mxu1 %v2542_v35  ;;  %2158 = vmatprep.mubr.msk.f32.mxu0 %vm707_vm1, %v3216_v38  ;;  %v471_v35 = vld [vmem:[#allocation2 + $0x5e8] sm:$0xff]  ;;  %v2464_v39 = vpack.c.bf16 %v462_v30, %v458_v29  ;;  %v2564_v40 = vpack.c.bf16 %v464_v33, %v460_v31  ;;  %v2582_v30 = vpack.c.bf16 %v1302_v24, %v1298_v23  ;;  %v1297_v31 = vld [vmem:[#allocation2 + $0xd00] sm:$0xff]  ;;  %v1299_v33 = vld [vmem:[#allocation2 + $0xd10] sm:$0xff] }
  0xfc   : > { %2159 = vmatprep.mubr.msk.f32.mxu1 %vm707_vm1, %v3216_v38  ;;  %v2552_v38 = vpack.c.bf16 %v440_v60, %v436_v16  ;;  %v2466_v41 = vpack.c.bf16 %v471_v35, %v467_v34  ;;  %v1282_v16 = vld [vmem:[#allocation2 + $0xc88] sm:$0xff]  ;;  %v1284_v60 = vld [vmem:[#allocation2 + $0xc98] sm:$0xff]  ;;  %v1303_v35 = vld [vmem:[#allocation2 + $0xd30] sm:$0xff] }
  0xfd   : > { %2445 = vmatpush1.bf16.msra.mxu0 %v2444_v42  ;;  %v466_v42 = vld [vmem:[#allocation2 + $0x5c0] sm:$0xff]  ;;  %v2674_v4 = vpack.c.bf16 %v1288_v61, %v1284_v60  ;;  %v1326_v60 = vld [vmem:[#allocation2 + $0xde8] sm:$0xff]  ;;  %v1324_v61 = vld [vmem:[#allocation2 + $0xdd8] sm:$0xff] }
  0xfe   : > { %2545 = vmatpush1.bf16.msra.mxu1 %v2544_v43  ;;  %2447 = vmatprep.subr.bf16.mxu0 %v2446_v44  ;;  %v470_v43 = vld [vmem:[#allocation2 + $0x5e0] sm:$0xff]  ;;  %v468_v44 = vld [vmem:[#allocation2 + $0x5d0] sm:$0xff]  ;;  %v1334_v8 = vld [vmem:[#allocation2 + $0xe28] sm:$0xff] }
  0xff   : > { %2547 = vmatprep.subr.bf16.mxu1 %v2546_v48  ;;  %v479_v48 = vld [vmem:[#allocation2 + $0x628] sm:$0xff]  ;;  %v2468_v51 = vpack.c.bf16 %v470_v43, %v466_v42  ;;  %v2568_v52 = vpack.c.bf16 %v472_v46, %v468_v44  ;;  %v2586_v42 = vpack.c.bf16 %v1310_v37, %v1306_v36  ;;  %v1305_v43 = vld [vmem:[#allocation2 + $0xd40] sm:$0xff]  ;;  %v1344_v23 = vld [vmem:[#allocation2 + $0xe78] sm:$0xff] }
 0x100   : > { %v2470_v53 = vpack.c.bf16 %v479_v48, %v475_v47  ;;  %v1309_v44 = vld [vmem:[#allocation2 + $0xd60] sm:$0xff]  ;;  %v1311_v47 = vld [vmem:[#allocation2 + $0xd70] sm:$0xff]  ;;  %v1314_v48 = vld [vmem:[#allocation2 + $0xd88] sm:$0xff] }
 0x101   : > { %2449 = vmatpush1.bf16.msra.mxu0 %v2448_v1  ;;  %v474_v1 = vld [vmem:[#allocation2 + $0x600] sm:$0xff] }
 0x102   : > { %2549 = vmatpush1.bf16.msra.mxu1 %v2548_v54  ;;  %2451 = vmatprep.subr.bf16.mxu0 %v2450_v55  ;;  %v478_v54 = vld [vmem:[#allocation2 + $0x620] sm:$0xff]  ;;  %v476_v55 = vld [vmem:[#allocation2 + $0x610] sm:$0xff] }
 0x103   : > { %2551 = vmatprep.subr.bf16.mxu1 %v2550_v58  ;;  %v1286_v58 = vld [vmem:[#allocation2 + $0xca8] sm:$0xff]  ;;  %v2472_v62 = vpack.c.bf16 %v478_v54, %v474_v1  ;;  %v2572_v63 = vpack.c.bf16 %v480_v57, %v476_v55  ;;  %v2590_v1 = vpack.c.bf16 %v1318_v49, %v1314_v48  ;;  %v1313_v54 = vld [vmem:[#allocation2 + $0xd80] sm:$0xff] }
 0x104   : > { %v2574_v0 = vpack.c.bf16 %v1286_v58, %v1282_v16  ;;  %v1317_v55 = vld [vmem:[#allocation2 + $0xda0] sm:$0xff]  ;;  %v1319_v16 = vld [vmem:[#allocation2 + $0xdb0] sm:$0xff]  ;;  %v1322_v58 = vld [vmem:[#allocation2 + $0xdc8] sm:$0xff] }
 0x105   : > { %2453 = vmatpush1.bf16.msra.mxu0 %v2452_v2  ;;  %v1281_v2 = vld [vmem:[#allocation2 + $0xc80] sm:$0xff] }
 0x106   : > { %2553 = vmatpush1.bf16.msra.mxu1 %v2552_v38  ;;  %2455 = vmatprep.subr.bf16.mxu0 %v2454_v3  ;;  %v1285_v38 = vld [vmem:[#allocation2 + $0xca0] sm:$0xff]  ;;  %v1283_v3 = vld [vmem:[#allocation2 + $0xc90] sm:$0xff] }
 0x107   : > { %2555 = vmatprep.subr.bf16.mxu1 %v2554_v7  ;;  %v1294_v7 = vld [vmem:[#allocation2 + $0xce8] sm:$0xff] }
 0x108   : > { %v2578_v17 = vpack.c.bf16 %v1294_v7, %v1290_v6  ;;  %v1327_v6 = vld [vmem:[#allocation2 + $0xdf0] sm:$0xff]  ;;  %v1330_v7 = vld [vmem:[#allocation2 + $0xe08] sm:$0xff] }
 0x109   : > { %2457 = vmatpush1.bf16.msra.mxu0 %v2456_v13  ;;  %v1486_v13 = vrot.slane %v2864_v12, 2 }
 0x10a   : > { %2557 = vmatpush1.bf16.msra.mxu1 %v2556_v14  ;;  %2459 = vmatprep.subr.bf16.mxu0 %v2458_v15  ;;  %v2576_v14 = vpack.c.bf16 %v1285_v38, %v1281_v2  ;;  %v2676_v15 = vpack.c.bf16 %v1287_v5, %v1283_v3  ;;  %v2594_v2 = vpack.c.bf16 %v1326_v60, %v1322_v58  ;;  %v1321_v38 = vld [vmem:[#allocation2 + $0xdc0] sm:$0xff] }
 0x10b   : > { %2559 = vmatprep.subr.bf16.mxu1 %v2558_v20  ;;  %v1291_v20 = vld [vmem:[#allocation2 + $0xcd0] sm:$0xff]  ;;  %v1325_v3 = vld [vmem:[#allocation2 + $0xde0] sm:$0xff] }
 0x10c   : > { %v2680_v29 = vpack.c.bf16 %v1295_v22, %v1291_v20  ;;  %v1338_v20 = vld [vmem:[#allocation2 + $0xe48] sm:$0xff]  ;;  %v1340_v22 = vld [vmem:[#allocation2 + $0xe58] sm:$0xff] }
 0x10d   : > { %2461 = vmatpush1.bf16.msra.mxu0 %v2460_v26  ;;  %v1304_v26 = vld [vmem:[#allocation2 + $0xd38] sm:$0xff] }
 0x10e   : > { %2561 = vmatpush1.bf16.msra.mxu1 %v2560_v27  ;;  %2463 = vmatprep.subr.bf16.mxu0 %v2462_v28  ;;  %v1487_v27 = vsel %vm1481_vm2, %v1485_v11, %v1486_v13  ;;  %v2580_v28 = vpack.c.bf16 %v1293_v19, %v1289_v18  ;;  %v2682_v34 = vpack.c.bf16 %v1304_v26, %v1300_v25  ;;  %v1335_v19 = vld [vmem:[#allocation2 + $0xe30] sm:$0xff] }
 0x10f   : > { %2563 = vmatprep.subr.bf16.mxu1 %v2562_v32  ;;  %v1301_v32 = vld [vmem:[#allocation2 + $0xd20] sm:$0xff]  ;;  %v2596_v11 = vpack.c.bf16 %v1325_v3, %v1321_v38  ;;  %v2598_v13 = vpack.c.bf16 %v1334_v8, %v1330_v7  ;;  %v2698_v18 = vpack.c.bf16 %v1336_v10, %v1332_v9  ;;  %v1367_v38 = vld [vmem:[#allocation2 + $0xf30] sm:$0xff]  ;;  %v1370_v3 = vld [vmem:[#allocation2 + $0xf48] sm:$0xff] }
 0x110   : > { %v1369_v10 = vld [vmem:[#allocation2 + $0xf40] sm:$0xff] }
 0x111   : > { %2465 = vmatpush1.bf16.msra.mxu0 %v2464_v39  ;;  %v1308_v39 = vld [vmem:[#allocation2 + $0xd58] sm:$0xff] }
 0x112   : > { %2565 = vmatpush1.bf16.msra.mxu1 %v2564_v40  ;;  %2467 = vmatprep.subr.bf16.mxu0 %v2466_v41  ;;  %v1312_v40 = vld [vmem:[#allocation2 + $0xd78] sm:$0xff]  ;;  %v2684_v41 = vpack.c.bf16 %v1303_v35, %v1299_v33  ;;  %v1350_v33 = vld [vmem:[#allocation2 + $0xea8] sm:$0xff] }
 0x113   : > { %2567 = vmatprep.subr.bf16.mxu1 %v2566_v45  ;;  %v1307_v45 = vld [vmem:[#allocation2 + $0xd50] sm:$0xff]  ;;  %v2686_v46 = vpack.c.bf16 %v1312_v40, %v1308_v39  ;;  %v1352_v35 = vld [vmem:[#allocation2 + $0xeb8] sm:$0xff]  ;;  %v1345_v40 = vld [vmem:[#allocation2 + $0xe80] sm:$0xff] }
 0x115   : > { %2469 = vmatpush1.bf16.msra.mxu0 %v2468_v51  ;;  %v1320_v51 = vld [vmem:[#allocation2 + $0xdb8] sm:$0xff] }
 0x116   : > { %2569 = vmatpush1.bf16.msra.mxu1 %v2568_v52  ;;  %2471 = vmatprep.subr.bf16.mxu0 %v2470_v53  ;;  %v2588_v52 = vpack.c.bf16 %v1309_v44, %v1305_v43  ;;  %v2688_v53 = vpack.c.bf16 %v1311_v47, %v1307_v45  ;;  %v2690_v57 = vpack.c.bf16 %v1320_v51, %v1316_v50  ;;  %v1351_v43 = vld [vmem:[#allocation2 + $0xeb0] sm:$0xff]  ;;  %v1354_v44 = vld [vmem:[#allocation2 + $0xec8] sm:$0xff]  ;;  %v1360_v47 = vld [vmem:[#allocation2 + $0xef8] sm:$0xff] }
 0x117   : > { %2571 = vmatprep.subr.bf16.mxu1 %v2570_v56  ;;  %v1315_v56 = vld [vmem:[#allocation2 + $0xd90] sm:$0xff]  ;;  %v1358_v45 = vld [vmem:[#allocation2 + $0xee8] sm:$0xff]  ;;  %v1353_v51 = vld [vmem:[#allocation2 + $0xec0] sm:$0xff] }
 0x118   : > { %v2610_v50 = vpack.c.bf16 %v1358_v45, %v1354_v44 }
 0x119   : > { %2473 = vmatpush1.bf16.msra.mxu0 %v2472_v62  ;;  %v1328_v62 = vld [vmem:[#allocation2 + $0xdf8] sm:$0xff] }
 0x11a   : > { %2573 = vmatpush1.bf16.msra.mxu1 %v2572_v63  ;;  %2575 = vmatprep.subr.bf16.mxu0 %v2574_v0  ;;  %v2592_v63 = vpack.c.bf16 %v1317_v55, %v1313_v54  ;;  %v2692_v0 = vpack.c.bf16 %v1319_v16, %v1315_v56  ;;  %v2694_v5 = vpack.c.bf16 %v1328_v62, %v1324_v61  ;;  %v1359_v54 = vld [vmem:[#allocation2 + $0xef0] sm:$0xff]  ;;  %v1362_v55 = vld [vmem:[#allocation2 + $0xf08] sm:$0xff]  ;;  %v1368_v16 = vld [vmem:[#allocation2 + $0xf38] sm:$0xff] }
 0x11b   : > { %2675 = vmatprep.subr.bf16.mxu1 %v2674_v4  ;;  %v1323_v4 = vld [vmem:[#allocation2 + $0xdd0] sm:$0xff]  ;;  %v1366_v56 = vld [vmem:[#allocation2 + $0xf28] sm:$0xff]  ;;  %v1361_v62 = vld [vmem:[#allocation2 + $0xf00] sm:$0xff] }
 0x11c   : > { %1132 = vmatmul.mubr.f32.vlgmr.msra.gmra.mrb[0].mxu0 %v3224_v59  ;;  %v2696_v12 = vpack.c.bf16 %v1327_v6, %v1323_v4  ;;  %v2614_v61 = vpack.c.bf16 %v1366_v56, %v1362_v55  ;;  %v1374_v4 = vld [vmem:[#allocation2 + $0xf68] sm:$0xff]  ;;  %v1376_v6 = vld [vmem:[#allocation2 + $0xf78] sm:$0xff] }
 0x11d   : > { %1274 = vmatmul.mubr.f32.vlgmr.msra.gmra.mrb[0].mxu1 %v3224_v59  ;;  %2577 = vmatpush1.bf16.msra.mxu0 %v2576_v14  ;;  %v2584_v59 = vpack.c.bf16 %v1301_v32, %v1297_v31  ;;  %v1329_v14 = vld [vmem:[#allocation2 + $0xe00] sm:$0xff]  ;;  %v1343_v31 = vld [vmem:[#allocation2 + $0xe70] sm:$0xff]  ;;  %v1346_v32 = vld [vmem:[#allocation2 + $0xe88] sm:$0xff]  ;;  %v2618_v9 = vpack.c.bf16 %v1374_v4, %v1370_v3 }
 0x11e   : > { %2677 = vmatpush1.bf16.msra.mxu1 %v2676_v15  ;;  %2579 = vmatprep.subr.bf16.mxu0 %v2578_v17  ;;  %v1333_v15 = vld [vmem:[#allocation2 + $0xe20] sm:$0xff]  ;;  %v1331_v17 = vld [vmem:[#allocation2 + $0xe10] sm:$0xff]  ;;  %v2606_v39 = vpack.c.bf16 %v1350_v33, %v1346_v32 }
 0x11f   : > { %2679 = vmatprep.subr.bf16.mxu1 %v2678_v21  ;;  %1563 = vmatprep.mubr.f32.mxu0 %v1487_v27  ;;  %v1342_v21 = vld [vmem:[#allocation2 + $0xe68] sm:$0xff]  ;;  %v2600_v24 = vpack.c.bf16 %v1333_v15, %v1329_v14  ;;  %v2700_v25 = vpack.c.bf16 %v1335_v19, %v1331_v17  ;;  %v1375_v14 = vld [vmem:[#allocation2 + $0xf70] sm:$0xff]  ;;  %v1384_v19 = vld [vmem:[#allocation2 + $0xfb8] sm:$0xff] }
 0x120   : > { %1705 = vmatprep.mubr.f32.mxu1 %v1487_v27  ;;  %v2602_v26 = vpack.c.bf16 %v1342_v21, %v1338_v20  ;;  %v1337_v27 = vld [vmem:[#allocation2 + $0xe40] sm:$0xff]  ;;  %v1378_v15 = vld [vmem:[#allocation2 + $0xf88] sm:$0xff] }
 0x121   : > { %2581 = vmatpush1.bf16.msra.mxu0 %v2580_v28  ;;  %v1341_v28 = vld [vmem:[#allocation2 + $0xe60] sm:$0xff]  ;;  %v1382_v17 = vld [vmem:[#allocation2 + $0xfa8] sm:$0xff] }
 0x122   : > { %2681 = vmatpush1.bf16.msra.mxu1 %v2680_v29  ;;  %2583 = vmatprep.subr.bf16.mxu0 %v2582_v30  ;;  %v1339_v29 = vld [vmem:[#allocation2 + $0xe50] sm:$0xff]  ;;  %v2702_v30 = vpack.c.bf16 %v1344_v23, %v1340_v22  ;;  %v2604_v36 = vpack.c.bf16 %v1341_v28, %v1337_v27  ;;  %v2622_v22 = vpack.c.bf16 %v1382_v17, %v1378_v15  ;;  %v1377_v23 = vld [vmem:[#allocation2 + $0xf80] sm:$0xff]  ;;  %v1386_v28 = vld [vmem:[#allocation2 + $0xfc8] sm:$0xff] }
 0x123   : > { %2683 = vmatprep.subr.bf16.mxu1 %v2682_v34  ;;  %v1348_v34 = vld [vmem:[#allocation2 + $0xe98] sm:$0xff]  ;;  %v2704_v37 = vpack.c.bf16 %v1343_v31, %v1339_v29  ;;  %v1383_v27 = vld [vmem:[#allocation2 + $0xfb0] sm:$0xff]  ;;  %v1390_v29 = vld [vmem:[#allocation2 + $0xfe8] sm:$0xff] }
 0x124   : > { %v1392_v31 = vld [vmem:[#allocation2 + $0xff8] sm:$0xff]  ;;  %v2865_v4 = vld [vmem:[%s3201_s6] sm:$0xff]  ;;  %v1418_v15 = vld [vmem:[#allocation2 + $0x10c8] sm:$0xff] }
 0x125   : > { %2585 = vmatpush1.bf16.msra.mxu0 %v2584_v59  ;;  %v1349_v59 = vld [vmem:[#allocation2 + $0xea0] sm:$0xff]  ;;  %v1422_v17 = vld [vmem:[#allocation2 + $0x10e8] sm:$0xff] }
 0x126   : > { %2685 = vmatpush1.bf16.msra.mxu1 %v2684_v41  ;;  %2587 = vmatprep.subr.bf16.mxu0 %v2586_v42  ;;  %v1347_v41 = vld [vmem:[#allocation2 + $0xe90] sm:$0xff]  ;;  %v2706_v42 = vpack.c.bf16 %v1352_v35, %v1348_v34  ;;  %v2608_v48 = vpack.c.bf16 %v1349_v59, %v1345_v40  ;;  %v2626_v34 = vpack.c.bf16 %v1390_v29, %v1386_v28  ;;  %v1385_v35 = vld [vmem:[#allocation2 + $0xfc0] sm:$0xff]  ;;  %v1394_v59 = vld [vmem:[#allocation2 + $0x1008] sm:$0xff] }
 0x127   : > { %2687 = vmatprep.subr.bf16.mxu1 %v2686_v46  ;;  %v1356_v46 = vld [vmem:[#allocation2 + $0xed8] sm:$0xff]  ;;  %v2708_v49 = vpack.c.bf16 %v1351_v43, %v1347_v41  ;;  %v1391_v40 = vld [vmem:[#allocation2 + $0xff0] sm:$0xff]  ;;  %v1398_v41 = vld [vmem:[#allocation2 + $0x1028] sm:$0xff] }
 0x128   : > { %v1400_v43 = vld [vmem:[#allocation2 + $0x1038] sm:$0xff]  ;;  %v1417_v28 = vld [vmem:[#allocation2 + $0x10c0] sm:$0xff] }
 0x129   : > { %2589 = vmatpush1.bf16.msra.mxu0 %v2588_v52  ;;  %v1357_v52 = vld [vmem:[#allocation2 + $0xee0] sm:$0xff] }
 0x12a   : > { %2689 = vmatpush1.bf16.msra.mxu1 %v2688_v53  ;;  %2591 = vmatprep.subr.bf16.mxu0 %v2590_v1  ;;  %v1355_v53 = vld [vmem:[#allocation2 + $0xed0] sm:$0xff]  ;;  %v2710_v1 = vpack.c.bf16 %v1360_v47, %v1356_v46  ;;  %v2612_v58 = vpack.c.bf16 %v1357_v52, %v1353_v51  ;;  %v2630_v46 = vpack.c.bf16 %v1398_v41, %v1394_v59  ;;  %v1393_v47 = vld [vmem:[#allocation2 + $0x1000] sm:$0xff]  ;;  %v1402_v52 = vld [vmem:[#allocation2 + $0x1048] sm:$0xff] }
 0x12b   : > { %2691 = vmatprep.subr.bf16.mxu1 %v2690_v57  ;;  %v1364_v57 = vld [vmem:[#allocation2 + $0xf18] sm:$0xff]  ;;  %v2712_v60 = vpack.c.bf16 %v1359_v54, %v1355_v53  ;;  %v1399_v51 = vld [vmem:[#allocation2 + $0x1030] sm:$0xff]  ;;  %v1406_v53 = vld [vmem:[#allocation2 + $0x1068] sm:$0xff] }
 0x12c   : > { %v1408_v54 = vld [vmem:[#allocation2 + $0x1078] sm:$0xff]  ;;  %v1421_v29 = vld [vmem:[#allocation2 + $0x10e0] sm:$0xff] }
 0x12d   : > { %2593 = vmatpush1.bf16.msra.mxu0 %v2592_v63  ;;  %v1365_v63 = vld [vmem:[#allocation2 + $0xf20] sm:$0xff] }
 0x12e   : > { %2693 = vmatpush1.bf16.msra.mxu1 %v2692_v0  ;;  %2595 = vmatprep.subr.bf16.mxu0 %v2594_v2  ;;  %v1363_v0 = vld [vmem:[#allocation2 + $0xf10] sm:$0xff]  ;;  %v2714_v2 = vpack.c.bf16 %v1368_v16, %v1364_v57  ;;  %v2616_v7 = vpack.c.bf16 %v1365_v63, %v1361_v62  ;;  %v2634_v57 = vpack.c.bf16 %v1406_v53, %v1402_v52  ;;  %v1401_v16 = vld [vmem:[#allocation2 + $0x1040] sm:$0xff]  ;;  %v1410_v63 = vld [vmem:[#allocation2 + $0x1088] sm:$0xff] }
 0x12f   : > { %2695 = vmatprep.subr.bf16.mxu1 %v2694_v5  ;;  %v1372_v5 = vld [vmem:[#allocation2 + $0xf58] sm:$0xff]  ;;  %v2716_v8 = vpack.c.bf16 %v1367_v38, %v1363_v0  ;;  %v1407_v62 = vld [vmem:[#allocation2 + $0x1070] sm:$0xff]  ;;  %v1414_v0 = vld [vmem:[#allocation2 + $0x10a8] sm:$0xff] }
 0x130   : > { %v1416_v38 = vld [vmem:[#allocation2 + $0x10b8] sm:$0xff]  ;;  %v1425_v41 = vld [vmem:[#allocation2 + $0x1100] sm:$0xff] }
 0x131   : > { %2597 = vmatpush1.bf16.msra.mxu0 %v2596_v11  ;;  %v1373_v11 = vld [vmem:[#allocation2 + $0xf60] sm:$0xff] }
 0x132   : > { %2697 = vmatpush1.bf16.msra.mxu1 %v2696_v12  ;;  %2599 = vmatprep.subr.bf16.mxu0 %v2598_v13  ;;  %v1371_v12 = vld [vmem:[#allocation2 + $0xf50] sm:$0xff]  ;;  %v2718_v13 = vpack.c.bf16 %v1376_v6, %v1372_v5  ;;  %v2620_v20 = vpack.c.bf16 %v1373_v11, %v1369_v10  ;;  %v1482_v5 = vrot.slane %v2865_v4, 2  ;;  %v2866_v6 = vld [vmem:[%s3201_s6 + $0x20] sm:$0x3] }
 0x133   : > { %2699 = vmatprep.subr.bf16.mxu1 %v2698_v18  ;;  %v1380_v18 = vld [vmem:[#allocation2 + $0xf98] sm:$0xff]  ;;  %v2720_v21 = vpack.c.bf16 %v1375_v14, %v1371_v12  ;;  %v1409_v10 = vld [vmem:[#allocation2 + $0x1080] sm:$0xff]  ;;  %v1411_v12 = vld [vmem:[#allocation2 + $0x1090] sm:$0xff] }
 0x134   : > { %v1413_v11 = vld [vmem:[#allocation2 + $0x10a0] sm:$0xff]  ;;  %v1415_v14 = vld [vmem:[#allocation2 + $0x10b0] sm:$0xff] }
 0x135   : > { %2601 = vmatpush1.bf16.msra.mxu0 %v2600_v24  ;;  %v1381_v24 = vld [vmem:[#allocation2 + $0xfa0] sm:$0xff]  ;;  %v1447_v4 = vld [vmem:[#allocation2 + $0x11b0] sm:$0xff] }
 0x136   : > { %2701 = vmatpush1.bf16.msra.mxu1 %v2700_v25  ;;  %2603 = vmatprep.subr.bf16.mxu0 %v2602_v26  ;;  %v1379_v25 = vld [vmem:[#allocation2 + $0xf90] sm:$0xff]  ;;  %v2722_v26 = vpack.c.bf16 %v1384_v19, %v1380_v18  ;;  %v2624_v32 = vpack.c.bf16 %v1381_v24, %v1377_v23  ;;  %v1420_v18 = vld [vmem:[#allocation2 + $0x10d8] sm:$0xff]  ;;  %v1433_v53 = vld [vmem:[#allocation2 + $0x1140] sm:$0xff] }
 0x137   : > { %2703 = vmatprep.subr.bf16.mxu1 %v2702_v30  ;;  %v1388_v30 = vld [vmem:[#allocation2 + $0xfd8] sm:$0xff]  ;;  %v2724_v33 = vpack.c.bf16 %v1383_v27, %v1379_v25  ;;  %v2640_v25 = vpack.c.bf16 %v1413_v11, %v1409_v10  ;;  %v2642_v27 = vpack.c.bf16 %v1422_v17, %v1418_v15  ;;  %v1455_v17 = vld [vmem:[#allocation2 + $0x11f0] sm:$0xff] }
 0x138   : > { %v1424_v19 = vld [vmem:[#allocation2 + $0x10f8] sm:$0xff] }
 0x139   : > { %2605 = vmatpush1.bf16.msra.mxu0 %v2604_v36  ;;  %v1389_v36 = vld [vmem:[#allocation2 + $0xfe0] sm:$0xff] }
 0x13a   : > { %2705 = vmatpush1.bf16.msra.mxu1 %v2704_v37  ;;  %2607 = vmatprep.subr.bf16.mxu0 %v2606_v39  ;;  %v1387_v37 = vld [vmem:[#allocation2 + $0xfd0] sm:$0xff]  ;;  %v2726_v39 = vpack.c.bf16 %v1392_v31, %v1388_v30  ;;  %v2628_v44 = vpack.c.bf16 %v1389_v36, %v1385_v35  ;;  %v2742_v31 = vpack.c.bf16 %v1424_v19, %v1420_v18  ;;  %v1428_v35 = vld [vmem:[#allocation2 + $0x1118] sm:$0xff]  ;;  %v1458_v18 = vld [vmem:[#allocation2 + $0x1208] sm:$0xff] }
 0x13b   : > { %2707 = vmatprep.subr.bf16.mxu1 %v2706_v42  ;;  %v1396_v42 = vld [vmem:[#allocation2 + $0x1018] sm:$0xff]  ;;  %v2728_v45 = vpack.c.bf16 %v1391_v40, %v1387_v37  ;;  %v1419_v30 = vld [vmem:[#allocation2 + $0x10d0] sm:$0xff]  ;;  %v1462_v19 = vld [vmem:[#allocation2 + $0x1228] sm:$0xff] }
 0x13c   : > { %v1432_v36 = vld [vmem:[#allocation2 + $0x1138] sm:$0xff] }
 0x13d   : > { %2609 = vmatpush1.bf16.msra.mxu0 %v2608_v48  ;;  %v1397_v48 = vld [vmem:[#allocation2 + $0x1020] sm:$0xff] }
 0x13e   : > { %2709 = vmatpush1.bf16.msra.mxu1 %v2708_v49  ;;  %2611 = vmatprep.subr.bf16.mxu0 %v2610_v50  ;;  %v1395_v49 = vld [vmem:[#allocation2 + $0x1010] sm:$0xff]  ;;  %v2730_v50 = vpack.c.bf16 %v1400_v43, %v1396_v42  ;;  %v2632_v55 = vpack.c.bf16 %v1397_v48, %v1393_v47  ;;  %v1429_v42 = vld [vmem:[#allocation2 + $0x1120] sm:$0xff]  ;;  %v1438_v47 = vld [vmem:[#allocation2 + $0x1168] sm:$0xff] }
 0x13f   : > { %2711 = vmatprep.subr.bf16.mxu1 %v2710_v1  ;;  %v1404_v1 = vld [vmem:[#allocation2 + $0x1058] sm:$0xff]  ;;  %v2732_v56 = vpack.c.bf16 %v1399_v51, %v1395_v49  ;;  %v1427_v43 = vld [vmem:[#allocation2 + $0x1110] sm:$0xff] }
 0x140   : > { %v1436_v48 = vld [vmem:[#allocation2 + $0x1158] sm:$0xff] }
 0x141   : > { %2613 = vmatpush1.bf16.msra.mxu0 %v2612_v58  ;;  %v1405_v58 = vld [vmem:[#allocation2 + $0x1060] sm:$0xff]  ;;  %v1440_v49 = vld [vmem:[#allocation2 + $0x1178] sm:$0xff] }
 0x142   : > { %2713 = vmatpush1.bf16.msra.mxu1 %v2712_v60  ;;  %2615 = vmatprep.subr.bf16.mxu0 %v2614_v61  ;;  %v1403_v60 = vld [vmem:[#allocation2 + $0x1050] sm:$0xff]  ;;  %v2734_v61 = vpack.c.bf16 %v1408_v54, %v1404_v1  ;;  %v2636_v3 = vpack.c.bf16 %v1405_v58, %v1401_v16  ;;  %v1437_v1 = vld [vmem:[#allocation2 + $0x1160] sm:$0xff]  ;;  %v1446_v16 = vld [vmem:[#allocation2 + $0x11a8] sm:$0xff] }
 0x143   : > { %2715 = vmatprep.subr.bf16.mxu1 %v2714_v2  ;;  %v1412_v2 = vld [vmem:[#allocation2 + $0x1098] sm:$0xff]  ;;  %v1435_v54 = vld [vmem:[#allocation2 + $0x1150] sm:$0xff] }
 0x144   : > { %v1444_v58 = vld [vmem:[#allocation2 + $0x1198] sm:$0xff] }
 0x145   : > { %2617 = vmatpush1.bf16.msra.mxu0 %v2616_v7  ;;  %v1483_v7 = vrot.slane %v2866_v6, 2  ;;  %v1454_v6 = vld [vmem:[#allocation2 + $0x11e8] sm:$0xff] }
 0x146   : > { %2717 = vmatpush1.bf16.msra.mxu1 %v2716_v8  ;;  %2619 = vmatprep.subr.bf16.mxu0 %v2618_v9  ;;  %v2736_v8 = vpack.c.bf16 %v1407_v62, %v1403_v60  ;;  %v2638_v9 = vpack.c.bf16 %v1414_v0, %v1410_v63  ;;  %v1448_v60 = vld [vmem:[#allocation2 + $0x11b8] sm:$0xff]  ;;  %v1441_v0 = vld [vmem:[#allocation2 + $0x1180] sm:$0xff] }
 0x147   : > { %2719 = vmatprep.subr.bf16.mxu1 %v2718_v13  ;;  %v2738_v13 = vpack.c.bf16 %v1416_v38, %v1412_v2  ;;  %v1484_v24 = vsel %vm1481_vm2, %v1482_v5, %v1483_v7  ;;  %v1445_v2 = vld [vmem:[#allocation2 + $0x11a0] sm:$0xff]  ;;  %v1443_v38 = vld [vmem:[#allocation2 + $0x1190] sm:$0xff]  ;;  %v1450_v5 = vld [vmem:[#allocation2 + $0x11c8] sm:$0xff] }
 0x148   : > { %v1452_v7 = vld [vmem:[#allocation2 + $0x11d8] sm:$0xff]  ;;  %v2756_v10 = vpack.c.bf16 %v1447_v4, %v1443_v38  ;;  %v2658_v11 = vpack.c.bf16 %v1454_v6, %v1450_v5 }
 0x149   : > { %2621 = vmatpush1.bf16.msra.mxu0 %v2620_v20  ;;  %v2867_v20 = vld [vmem:[%s3201_s6 + $0x18] sm:$0xff] }
 0x14a   : > { %2721 = vmatpush1.bf16.msra.mxu1 %v2720_v21  ;;  %2623 = vmatprep.subr.bf16.mxu0 %v2622_v22  ;;  %v1491_v21 = vrot.slane %v2867_v20, 2  ;;  %v2868_v22 = vld [vmem:[%s3201_s6 + $0x38] sm:$0x3] }
 0x14b   : > { %2723 = vmatprep.subr.bf16.mxu1 %v2722_v26  ;;  %v1492_v23 = vrot.slane %v2868_v22, 2  ;;  %v2740_v26 = vpack.c.bf16 %v1415_v14, %v1411_v12  ;;  %v1449_v12 = vld [vmem:[#allocation2 + $0x11c0] sm:$0xff]  ;;  %v1451_v14 = vld [vmem:[#allocation2 + $0x11d0] sm:$0xff]  ;;  %v1460_v20 = vld [vmem:[#allocation2 + $0x1218] sm:$0xff] }
 0x14d   : > { %2625 = vmatpush1.bf16.msra.mxu0 %v2624_v32  ;;  %v1423_v32 = vld [vmem:[#allocation2 + $0x10f0] sm:$0xff]  ;;  %v1493_v37 = vsel %vm1481_vm2, %v1491_v21, %v1492_v23  ;;  %v1464_v21 = vld [vmem:[#allocation2 + $0x1238] sm:$0xff]  ;;  %v2760_v23 = vpack.c.bf16 %v1455_v17, %v1451_v14 }
 0x14e   : > { %2725 = vmatpush1.bf16.msra.mxu1 %v2724_v33  ;;  %2627 = vmatprep.subr.bf16.mxu0 %v2626_v34  ;;  %v1426_v33 = vld [vmem:[#allocation2 + $0x1108] sm:$0xff]  ;;  %v2744_v40 = vpack.c.bf16 %v1423_v32, %v1419_v30  ;;  %v1468_v32 = vld [vmem:[#allocation2 + $0x1258] sm:$0xff] }
 0x14f   : > { %2727 = vmatprep.subr.bf16.mxu1 %v2726_v39  ;;  %v1430_v34 = vld [vmem:[#allocation2 + $0x1128] sm:$0xff]  ;;  %v2644_v39 = vpack.c.bf16 %v1421_v29, %v1417_v28  ;;  %v2762_v28 = vpack.c.bf16 %v1464_v21, %v1460_v20  ;;  %v1463_v29 = vld [vmem:[#allocation2 + $0x1230] sm:$0xff] }
 0x150   : > { %v2646_v59 = vpack.c.bf16 %v1430_v34, %v1426_v33  ;;  %v1466_v30 = vld [vmem:[#allocation2 + $0x1248] sm:$0xff]  ;;  %v1472_v33 = vld [vmem:[#allocation2 + $0x1278] sm:$0xff] }
 0x151   : > { %2629 = vmatpush1.bf16.msra.mxu0 %v2628_v44  ;;  %v2746_v44 = vpack.c.bf16 %v1432_v36, %v1428_v35 }
 0x152   : > { %2729 = vmatpush1.bf16.msra.mxu1 %v2728_v45  ;;  %2631 = vmatprep.subr.bf16.mxu0 %v2630_v46  ;;  %v1431_v45 = vld [vmem:[#allocation2 + $0x1130] sm:$0xff]  ;;  %v1434_v46 = vld [vmem:[#allocation2 + $0x1148] sm:$0xff] }
 0x153   : > { %2731 = vmatprep.subr.bf16.mxu1 %v2730_v50  ;;  %v2648_v50 = vpack.c.bf16 %v1429_v42, %v1425_v41  ;;  %v2748_v51 = vpack.c.bf16 %v1431_v45, %v1427_v43  ;;  %v2650_v52 = vpack.c.bf16 %v1438_v47, %v1434_v46  ;;  %v1471_v41 = vld [vmem:[#allocation2 + $0x1270] sm:$0xff]  ;;  %v1474_v42 = vld [vmem:[#allocation2 + $0x1288] sm:$0xff]  ;;  %v1480_v45 = vld [vmem:[#allocation2 + $0x12b8] sm:$0xff] }
 0x154   : > { %v1478_v43 = vld [vmem:[#allocation2 + $0x12a8] sm:$0xff] }
 0x155   : > { %2633 = vmatpush1.bf16.msra.mxu0 %v2632_v55  ;;  %v2750_v55 = vpack.c.bf16 %v1440_v49, %v1436_v48  ;;  %v2670_v48 = vpack.c.bf16 %v1478_v43, %v1474_v42  ;;  %v1473_v49 = vld [vmem:[#allocation2 + $0x1280] sm:$0xff] }
 0x156   : > { %2733 = vmatpush1.bf16.msra.mxu1 %v2732_v56  ;;  %2635 = vmatprep.subr.bf16.mxu0 %v2634_v57  ;;  %v1439_v56 = vld [vmem:[#allocation2 + $0x1170] sm:$0xff]  ;;  %v1442_v57 = vld [vmem:[#allocation2 + $0x1188] sm:$0xff] }
 0x157   : > { %2735 = vmatprep.subr.bf16.mxu1 %v2734_v61  ;;  %v2652_v61 = vpack.c.bf16 %v1437_v1, %v1433_v53  ;;  %v2752_v62 = vpack.c.bf16 %v1439_v56, %v1435_v54  ;;  %v2654_v63 = vpack.c.bf16 %v1446_v16, %v1442_v57  ;;  %v1479_v53 = vld [vmem:[#allocation2 + $0x12b0] sm:$0xff] }
 0x158   : > { %v2869_v54 = vld [vmem:[%s3201_s6 + $0x10] sm:$0xff] }
 0x159   : > { %2637 = vmatpush1.bf16.msra.mxu0 %v2636_v3  ;;  %v2754_v3 = vpack.c.bf16 %v1448_v60, %v1444_v58  ;;  %v2870_v56 = vld [vmem:[%s3201_s6 + $0x30] sm:$0x3]  ;;  %v3035_v60 = vmov 0.0   ;;  %s3037_s6 = smov [#allocation7]  }
 0x15a   : > { %2737 = vmatpush1.bf16.msra.mxu1 %v2736_v8  ;;  %2639 = vmatprep.subr.bf16.mxu0 %v2638_v9  ;;  %v1456_v8 = vld [vmem:[#allocation2 + $0x11f8] sm:$0xff]  ;;  %v2656_v9 = vpack.c.bf16 %v1445_v2, %v1441_v0  ;;  %v1489_v57 = vrot.slane %v2870_v56, 2  ;;  %1813 = vst [vmem:[%s3258_s12] sm:$0xff] %v3035_v60  ;;  %1817 = vst [vmem:[%s3258_s12 + $0x20] sm:$0x3] %v3035_v60  ;;  %v1787_v0 = vld [vmem:[#allocation5] sm:$0xf] }
 0x15b   : > { %2739 = vmatprep.subr.bf16.mxu1 %v2738_v13  ;;  %v1453_v13 = vld [vmem:[#allocation2 + $0x11e0] sm:$0xff]  ;;  %v2758_v15 = vpack.c.bf16 %v1456_v8, %v1452_v7  ;;  %1814 = vst [vmem:[%s3258_s12 + $0x8] sm:$0xff] %v3035_v60  ;;  %1815 = vst [vmem:[%s3258_s12 + $0x10] sm:$0xff] %v3035_v60  ;;  %s2931_s9 = sshll.u32 %s3037_s6, 4  ;;  %s2932_s9 = int_to_ptr.vmem [resolvable:$false] %s2931_s9 }
 0x15c   : > { %1564 = vmatmul.mubr.f32.vlgmr.msra.gmra.mrb[0].mxu0 %v1484_v24  ;;  %v2660_v22 = vpack.c.bf16 %v1453_v13, %v1449_v12  ;;  %1816 = vst.msk [vmem:[%s3258_s12 + $0x18] sm:$0xff] %vm707_vm1, %v3035_v60  ;;  %1818 = vst [vmem:[%s3258_s12 + $0x28] sm:$0x3] %v3035_v60  ;;  %v3036_v12 = vmov 1966171168   ;;  %s2933_s11 = scalar_lea.vmem %s2932_s9, 128  ;;  %p2934_p4 = scmp.lt.s32.totalorder %s3309_s17, %s2932_s9 }
 0x15d   : > { %2641 = vmatpush1.bf16.msra.mxu0 %v2640_v25  ;;  %1706 = vmatmul.mubr.f32.vlgmr.msra.gmra.mrb[0].mxu1 %v1484_v24  ;;  %v2662_v24 = vpack.c.bf16 %v1462_v19, %v1458_v18  ;;  %v1457_v25 = vld [vmem:[#allocation2 + $0x1200] sm:$0xff]  ;;  %1819 = vst [vmem:[%s3258_s12 + $0x30] sm:$0x3] %v3035_v60  ;;  %1821 = vst.msk [vmem:[%s3258_s12 + $0x38] sm:$0x3] %vm1820_vm3, %v3035_v60  ;;  %v3276_v13 = vunpack.c.l.s4 %v3036_v12  ;;  %p2935_p7 = scmp.lt.s32.totalorder %s2933_s11, %s2927_s26 }
 0x15e   : > { %2741 = vmatpush1.bf16.msra.mxu1 %v2740_v26  ;;  %2643 = vmatprep.subr.bf16.mxu0 %v2642_v27  ;;  %v1461_v26 = vld [vmem:[#allocation2 + $0x1220] sm:$0xff]  ;;  %v1459_v27 = vld [vmem:[#allocation2 + $0x1210] sm:$0xff] }
 0x15f   : > { %2743 = vmatprep.subr.bf16.mxu1 %v2742_v31  ;;  %2160 = vmatprep.mubr.msk.f32.mxu0 %vm707_vm1, %v1493_v37  ;;  %v1470_v31 = vld [vmem:[#allocation2 + $0x1268] sm:$0xff]  ;;  %v2664_v34 = vpack.c.bf16 %v1461_v26, %v1457_v25  ;;  %v2764_v35 = vpack.c.bf16 %v1463_v29, %v1459_v27  ;;  %p2936_p8 = por %p2935_p7, %p2934_p4 }
 0x160   : > { %2161 = vmatprep.mubr.msk.f32.mxu1 %vm707_vm1, %v1493_v37  ;;  %v2666_v36 = vpack.c.bf16 %v1470_v31, %v1466_v30  ;;  %v1465_v37 = vld [vmem:[#allocation2 + $0x1240] sm:$0xff] }
 0x161   : > { %2645 = vmatpush1.bf16.msra.mxu0 %v2644_v39  ;;  %v1469_v39 = vld [vmem:[#allocation2 + $0x1260] sm:$0xff]  ;;  %p2937_p11 = pnand %p2936_p8, %p2930_p3 }
 0x162   : > { %2745 = vmatpush1.bf16.msra.mxu1 %v2744_v40  ;;  %2647 = vmatprep.subr.bf16.mxu0 %v2646_v59  ;;  %v1467_v40 = vld [vmem:[#allocation2 + $0x1250] sm:$0xff]  ;;  %v2766_v59 = vpack.c.bf16 %v1472_v33, %v1468_v32  ;;  %v2668_v46 = vpack.c.bf16 %v1469_v39, %v1465_v37 }
 0x163   : > { %2747 = vmatprep.subr.bf16.mxu1 %v2746_v44  ;;  %v1476_v44 = vld [vmem:[#allocation2 + $0x1298] sm:$0xff]  ;;  %v2768_v47 = vpack.c.bf16 %v1471_v41, %v1467_v40 }
 0x165   : > { %2649 = vmatpush1.bf16.msra.mxu0 %v2648_v50  ;;  %v1477_v50 = vld [vmem:[#allocation2 + $0x12a0] sm:$0xff] }
 0x166   : > { %2749 = vmatpush1.bf16.msra.mxu1 %v2748_v51  ;;  %2651 = vmatprep.subr.bf16.mxu0 %v2650_v52  ;;  %v2770_v51 = vpack.c.bf16 %v1480_v45, %v1476_v44  ;;  %v1475_v52 = vld [vmem:[#allocation2 + $0x1290] sm:$0xff]  ;;  %v2672_v1 = vpack.c.bf16 %v1477_v50, %v1473_v49 }
 0x167   : > { %2751 = vmatprep.subr.bf16.mxu1 %v2750_v55  ;;  %v1488_v55 = vrot.slane %v2869_v54, 2  ;;  %v2772_v16 = vpack.c.bf16 %v1479_v53, %v1475_v52 }
 0x169   : > { %2653 = vmatpush1.bf16.msra.mxu0 %v2652_v61  ;;  %v1490_v58 = vsel %vm1481_vm2, %v1488_v55, %v1489_v57  ;;  %v1789_v61 = vlaneseq }
 0x16a   : > { %2753 = vmatpush1.bf16.msra.mxu1 %v2752_v62  ;;  %2655 = vmatprep.subr.bf16.mxu0 %v2654_v63 }
 0x16b   : > { %2755 = vmatprep.subr.bf16.mxu1 %v2754_v3  ;;  %v3270_v62 = vshrl.u32 %v1789_v61, 7  ;;  %vm3298_vm6 = vcmp.lt.s32.totalorder %v1789_v61, 400 }
 0x16d   : > { %2657 = vmatpush1.bf16.msra.mxu0 %v2656_v9  ;;  %v1791_v63 = vsub.s32 0, %v3270_v62  ;;  %v1799_v2 = vsub.s32 2, %v3270_v62  ;;  %v1795_v38 = vsub.s32 1, %v3270_v62  ;;  %v1803_v3 = vsub.s32 3, %v3270_v62 }
 0x16e   : > { %2757 = vmatpush1.bf16.msra.mxu1 %v2756_v10  ;;  %2659 = vmatprep.subr.bf16.mxu0 %v2658_v11 }
 0x16f   : > { %2759 = vmatprep.subr.bf16.mxu1 %v2758_v15  ;;  %v1792_v4 = vrot.slane %v1787_v0, %v1791_v63  ;;  %v1800_v5 = vrot.slane %v1787_v0, %v1799_v2  ;;  %v1796_v6 = vrot.slane %v1787_v0, %v1795_v38  ;;  %v1804_v7 = vrot.slane %v1787_v0, %v1803_v3 }
 0x171   : > { %2661 = vmatpush1.bf16.msra.mxu0 %v2660_v22 }
 0x172   : > { %2761 = vmatpush1.bf16.msra.mxu1 %v2760_v23  ;;  %2663 = vmatprep.subr.bf16.mxu0 %v2662_v24 }
 0x173   : > { %2763 = vmatprep.subr.bf16.mxu1 %v2762_v28 }
 0x175   : > { %2665 = vmatpush1.bf16.msra.mxu0 %v2664_v34 }
 0x176   : > { %2765 = vmatpush1.bf16.msra.mxu1 %v2764_v35  ;;  %2667 = vmatprep.subr.bf16.mxu0 %v2666_v36 }
 0x177   : > { %2767 = vmatprep.subr.bf16.mxu1 %v2766_v59 }
 0x179   : > { %2669 = vmatpush1.bf16.msra.mxu0 %v2668_v46 }
 0x17a   : > { %2769 = vmatpush1.bf16.msra.mxu1 %v2768_v47  ;;  %2671 = vmatprep.subr.bf16.mxu0 %v2670_v48 }
 0x17b   : > { %2771 = vmatprep.subr.bf16.mxu1 %v2770_v51 }
 0x17d   : > { %2673 = vmatpush1.bf16.msra.mxu0 %v2672_v1  ;;  %v1877_v1 = vunpack.c.0.s8 %v3276_v13 }
 0x17e   : > { %2773 = vmatpush1.bf16.msra.mxu1 %v2772_v16 }
 0x180   : > { %1635 = vmatmul.mubr.f32.vlgmr.msra.gmra.mrb[0].mxu0 %v1490_v58 }
 0x181   : > { %1777 = vmatmul.mubr.f32.vlgmr.msra.gmra.mrb[0].mxu1 %v1490_v58 }
 0x253   : > { %v1636_v8 = vpop.f32.mrb[0].mxu0 }
 0x254   : > { %v1809_v9 = vadd.f32 %v1792_v4, %v1636_v8  ;;  %v1778_v10 = vpop.f32.mrb[0].mxu1  ;;  %v1638_v11 = vpop.f32.mrb[1].mxu0 }
 0x255   : > { %v1811_v14 = vadd.f32 %v1800_v5, %v1778_v10  ;;  %v1810_v15 = vadd.f32 %v1796_v6, %v1638_v11  ;;  %v1780_v17 = vpop.f32.mrb[1].mxu1  ;;  %v1880_v5 = vsub.s32 %v1877_v1, %v3270_v62 }
 0x256   : > { %v1826_v18 = vrot.slane %v1809_v9, 7  ;;  %v1844_v19 = vrot.slane %v1809_v9, 4  ;;  %v1903_v20 = vmul.f32 %v1809_v9, %v1809_v9  ;;  %v1812_v21 = vadd.f32 %v1804_v7, %v1780_v17 }
 0x257   : > { %v1828_v22 = vrot.slane %v1811_v14, 7  ;;  %v1856_v23 = vrot.slane %v1811_v14, 4  ;;  %v1905_v24 = vmul.f32 %v1811_v14, %v1811_v14  ;;  %v1827_v25 = vrot.slane %v1810_v15, 7 }
 0x258   : > { %1834 = vst [vmem:[%s3258_s12] sm:$0xfe] %v1826_v18  ;;  %1839 = vst [vmem:[%s3258_s12 + $0x20] sm:$0x1] %v1826_v18  ;;  %v1845_v26 = vadd.f32 %v1844_v19, %v1809_v9  ;;  %v1907_v27 = vrot.slane %v1903_v20, 4  ;;  %v1850_v28 = vrot.slane %v1810_v15, 4  ;;  %v1904_v29 = vmul.f32 %v1810_v15, %v1810_v15 }
 0x259   : > { %1836 = vst [vmem:[%s3258_s12 + $0x10] sm:$0xfe] %v1828_v22  ;;  %1841 = vst [vmem:[%s3258_s12 + $0x30] sm:$0x1] %v1828_v22  ;;  %v1857_v30 = vadd.f32 %v1856_v23, %v1811_v14  ;;  %v1919_v31 = vrot.slane %v1905_v24, 4  ;;  %v1829_v32 = vrot.slane %v1812_v21, 7  ;;  %v1906_v41 = vmul.f32 %v1812_v21, %v1812_v21 }
 0x25a   : > { %1835 = vst [vmem:[%s3258_s12 + $0x8] sm:$0xfe] %v1827_v25  ;;  %1840 = vst [vmem:[%s3258_s12 + $0x28] sm:$0x1] %v1827_v25  ;;  %v1862_v33 = vsel %vm707_vm1, %v1812_v21, 0.0  ;;  %v1846_v34 = vrot.slane %v1845_v26, 2  ;;  %v1908_v35 = vadd.f32 %v1907_v27, %v1903_v20  ;;  %v1851_v36 = vadd.f32 %v1850_v28, %v1810_v15 }
 0x25b   : > { %v1913_v37 = vrot.slane %v1904_v29, 4  ;;  %v1858_v39 = vrot.slane %v1857_v30, 2  ;;  %v1920_v40 = vadd.f32 %v1919_v31, %v1905_v24  ;;  %1838 = vst.msk [vmem:[%s3258_s12 + $0x18] sm:$0xfe] %vm1837_vm4, %v1829_v32  ;;  %v1863_v59 = vrot.slane %v1862_v33, 4 }
 0x25c   : > { %1843 = vst.msk [vmem:[%s3258_s12 + $0x38] sm:$0x1] %vm1842_vm5, %v1829_v32  ;;  %v1847_v42 = vadd.f32 %v1846_v34, %v1845_v26  ;;  %v1909_v43 = vrot.slane %v1908_v35, 2  ;;  %v1852_v44 = vrot.slane %v1851_v36, 2  ;;  %v1925_v49 = vsel %vm707_vm1, %v1906_v41, 0.0 }
 0x25d   : > { %v1914_v45 = vadd.f32 %v1913_v37, %v1904_v29  ;;  %v1859_v46 = vadd.f32 %v1858_v39, %v1857_v30  ;;  %v1921_v47 = vrot.slane %v1920_v40, 2  ;;  %v1864_v48 = vadd.f32 %v1863_v59, %v1862_v33 }
 0x25e   : > { %v1848_v50 = vrot.slane %v1847_v42, 1  ;;  %v1910_v51 = vadd.f32 %v1909_v43, %v1908_v35  ;;  %v1853_v52 = vadd.f32 %v1852_v44, %v1851_v36  ;;  %v1926_v55 = vrot.slane %v1925_v49, 4 }
 0x25f   : > { %v1915_v53 = vrot.slane %v1914_v45, 2  ;;  %v1865_v54 = vrot.slane %v1864_v48, 2  ;;  %v1860_v60 = vrot.slane %v1859_v46, 1  ;;  %v1922_v63 = vadd.f32 %v1921_v47, %v1920_v40 }
 0x260   : > { %v1849_v56 = vadd.f32 %v1848_v50, %v1847_v42  ;;  %v1911_v57 = vrot.slane %v1910_v51, 1  ;;  %v1854_v16 = vrot.slane %v1853_v52, 1  ;;  %v1927_v2 = vadd.f32 %v1926_v55, %v1925_v49 }
 0x261   : > { %v1916_v58 = vadd.f32 %v1915_v53, %v1914_v45  ;;  %v1866_v0 = vadd.f32 %v1865_v54, %v1864_v48  ;;  %v1861_v10 = vadd.f32 %v1860_v60, %v1859_v46  ;;  %v1923_v11 = vrot.slane %v1922_v63, 1 }
 0x262   : > { %v1912_v38 = vadd.f32 %v1911_v57, %v1910_v51  ;;  %v1855_v3 = vadd.f32 %v1854_v16, %v1853_v52  ;;  %v1928_v7 = vrot.slane %v1927_v2, 2 }
 0x263   : > { %v1917_v4 = vrot.slane %v1916_v58, 1  ;;  %v1867_v6 = vrot.slane %v1866_v0, 1  ;;  %v1924_v19 = vadd.f32 %v1923_v11, %v1922_v63 }
 0x264   : > { %v1873_v8 = vcombine.low %v1849_v56, %v1855_v3  ;;  %v1929_v13 = vadd.f32 %v1928_v7, %v1927_v2 }
 0x265   : > { %v1918_v9 = vadd.f32 %v1917_v4, %v1916_v58  ;;  %v1868_v12 = vadd.f32 %v1867_v6, %v1866_v0 }
 0x266   : > { %v1881_v15 = vrot.slane %v1873_v8, %v1880_v5  ;;  %v1930_v18 = vrot.slane %v1929_v13, 1 }
 0x267   : > { %v1936_v14 = vcombine.low %v1912_v38, %v1918_v9  ;;  %v1874_v17 = vcombine.low %v1861_v10, %v1868_v12 }
 0x268   : > { %v1931_v21 = vadd.f32 %v1930_v18, %v1929_v13 }
 0x269   : > { %v1888_v20 = vrot.slane %v1874_v17, %v1880_v5  ;;  %v1944_v23 = vrot.slane %v1936_v14, %v1880_v5 }
 0x26a   : > { %v1937_v62 = vcombine.low %v1924_v19, %v1931_v21 }
 0x26b   : > { %v1889_v22 = vcombine.low %v1881_v15, %v1888_v20 }
 0x26c   : > { %v1951_v25 = vrot.slane %v1937_v62, %v1880_v5 }
 0x26d   : > { %v1896_v26 = vrot.slane %v1889_v22, %v1880_v5 }
 0x26e   : > { %v1952_v61 = vcombine.low %v1944_v23, %v1951_v25 }
 0x26f   : > { %1902 = vst.msk [vmem:[%s256_s16] sm:$0xf] %vm3298_vm6, %v1896_v26 }
 0x270   : > { %2940 = shalt.err (!%p2937_p11)
}
 0x271   : > { %s2941_s12 = scalar_lea.hbm %s3307_s25, 64  ;;  %s2945_s7 = scalar_lea.hbm %s3395_s4, 128 }
 0x272   : > { %p2942_p13 = scmp.ne.s32.totalorder %s3307_s25, %s2941_s12  ;;  %p2946_p6 = scmp.lt.u32.totalorder %s3307_s25, %s3395_s4 }
 0x273   : > { %p2947_p9 = scmp.lt.u32.totalorder %s2945_s7, %s2941_s12  ;;  %p2949_p10 = scmp.lt.u32.totalorder %s2941_s12, %s3307_s25 }
 0x274   : > { %p2943_p5 = pnand %p2942_p13, %p3411_p1 }
 0x275   : > { %p2948_p12 = por %p2947_p9, %p2946_p6 }
 0x276   : > { %p2944_p0 = pneg %p2943_p5 }
 0x277   : > { %p2950_p2 = por %p2949_p10, %p2948_p12 }
 0x279   : > { %p2951_p3 = pnand %p2950_p2, %p2944_p0 }
 0x27b   : > { %2954 = shalt.err (!%p2951_p3)
}
 0x27c   : > { %2802 = dma.vmem_to_hbm [thread:$0]  (%p3411_p1), %s3309_s17, 64, %s3307_s25, %s1968_s10   ;;  %v1959_v27 = vrot.slane %v1952_v61, %v1880_v5 }
 0x27d   : > { %s3343_s11 = scalar_lea.hbm %s3396_s5, %s2172_s15  ;;  %s1973_s12 = scalar_lea.sflag [#allocation9], %s3292_s13 }
 0x27e   : > { %1961 = vst.msk [vmem:[%s3311_s30] sm:$0xf] %vm3298_vm6, %v1959_v27  ;;  %s2955_s14 = scalar_lea.vmem %s3347_s8, 64  ;;  %s3038_s22 = smov [#allocation8]  }
 0x27f   : > { %p2956_p4 = scmp.ne.s32.totalorder %s3347_s8, %s2955_s14  ;;  %s2959_s17 = sshll.u32 %s3038_s22, 4  ;;  %s2960_s17 = int_to_ptr.vmem [resolvable:$false] %s2959_s17 }
 0x280   : > { %s2961_s15 = scalar_lea.vmem %s2960_s17, 128  ;;  %p2962_p11 = scmp.lt.s32.totalorder %s3347_s8, %s2960_s17 }
 0x281   : > { %p2957_p7 = pnand %p2956_p4, %p3411_p1  ;;  %p2963_p13 = scmp.lt.s32.totalorder %s2961_s15, %s2955_s14 }
 0x283   : > { %p2958_p8 = pneg %p2957_p7  ;;  %p2964_p5 = por %p2963_p13, %p2962_p11 }
 0x285   : > { %p2965_p0 = pnand %p2964_p5, %p2958_p8 }
 0x287   : > { %2968 = shalt.err (!%p2965_p0)
}
 0x288   : > { %s2969_s13 = scalar_lea.hbm %s3343_s11, 64  ;;  %s2973_s10 = scalar_lea.hbm %s3396_s5, 128 }
 0x289   : > { %p2970_p6 = scmp.ne.s32.totalorder %s3343_s11, %s2969_s13  ;;  %p2974_p10 = scmp.lt.u32.totalorder %s3343_s11, %s3396_s5 }
 0x28a   : > { %p2975_p2 = scmp.lt.u32.totalorder %s2973_s10, %s2969_s13  ;;  %p2977_p4 = scmp.lt.u32.totalorder %s2969_s13, %s3343_s11 }
 0x28b   : > { %p2971_p9 = pnand %p2970_p6, %p3411_p1 }
 0x28c   : > { %p2976_p3 = por %p2975_p2, %p2974_p10 }
 0x28d   : > { %p2972_p12 = pneg %p2971_p9 }
 0x28e   : > { %p2978_p7 = por %p2977_p4, %p2976_p3 }
 0x290   : > { %p2979_p8 = pnand %p2978_p7, %p2972_p12 }
 0x292   : > { %2982 = shalt.err (!%p2979_p8)
}
 0x293   : > { %2803 = dma.vmem_to_hbm [thread:$0]  (%p3411_p1), %s3347_s8, 64, %s3343_s11, %s1973_s12  }
 0x294 PF: > { %p2824_p11 = scmp.ge.s32.totalorder %s3029_s21, 2  ;;  %s2024_s23 = sand.u32 1, %s3017_s18  }
 0x295   : > { %p3412_p13 = scmp.ne.s32.totalorder %s3401_s29, 0  ;;  %s2025_s6 = scalar_lea.sflag [#allocation4], %s2024_s23 }
 0x297   : > { %p2814_p5 = pnand %p2824_p11, %p3412_p13 }
 0x299   : > { %3008 = dma.done.wait (!%p2814_p5), %s2025_s6, 64  }
 0x29a   : > { %3010 = vsyncadd (!%p2814_p5), %s2025_s6, 4294967232  ;;  %s2034_s26 = scalar_lea.sflag [#allocation9], %s2024_s23 }
 0x29b   : > { %3012 = dma.done.wait (!%p2814_p5), %s2034_s26, 64  }
 0x29c   : > { %3014 = vsyncadd (!%p2814_p5), %s2034_s26, 4294967232  ;;  %p21_p1 = scmp.ge.s32.totalorder %s3094_s24, 4   ;;  %s3413_s18 = smov %s3021_s19 }
 0x29d   : > { %s3414_s19 = smov %s3025_s20  ;;  %s3415_s20 = smov %s3105_s27 }
 0x29e   : > { %s3416_s21 = smov %s3094_s24  ;;  %23 = sbr.rel (!%p21_p1) target bundleno = 7 (0x7), region = 107 }
 0x2a5   :  { %2039 = vsyncpa [#allocation3], 1 }
 0x2a6   :  { %2041 = vsyncpa [#allocation3 + $0x1], 1 }
 0x2a7   :  { %2042 = vsyncpa [#allocation6], 1 }
 0x2a8   :  { %2043 = vsyncpa [#allocation4], 1 }
 0x2a9   :  { %2045 = vsyncpa [#allocation4 + $0x1], 1 }
 0x2aa   :  { %2046 = vsyncpa [#allocation9], 1 }
 0x2ab   :  { %2048 = vsyncpa [#allocation9 + $0x1], 1 }

</bundles_post_ra>
